<compile_context>
chip_gen: v5e
topology: v5e:2x2
jax: 0.10.0
libtpu: 0.0.40
codegen_flags: <defaults>
</compile_context>

<pallas_src>
import jax
import jax.numpy as jnp
from jax.experimental import pallas as pl
from jax.experimental.pallas import tpu as pltpu


def full_spec(shape):
    """Whole-array-as-one-block BlockSpec (small shapes; gridless call)."""
    ndim = len(shape)
    return pl.BlockSpec(shape, lambda *_: (0,) * ndim)


# ----------------------------------------------------------------------------- kernel
def make_fused_kernel(indices, steps, layers, feat_dim, hidden):
    """Fused forward: (preprocess1 + `steps` GCN ops + 'add' combine) x layers + classifier.

    All structural parameters are static Python values, so the whole network is unrolled
    at trace time; weight/bias slab offsets are compile-time constants.
    """
    indices = tuple(int(i) for i in indices)
    assert 0 not in indices  # preprocess0 path is dead for this action (see TODO above)

    def kernel(x_ref, a_ref, w_ref, b_ref, out_ref):
        def wslab(off, rows):               # bf16 weight chunk [rows, hidden]
            return w_ref[pl.ds(off, rows), :]

        def bias(row):                      # f32 bias row [1, hidden]
            return b_ref[pl.ds(row, 1), :]

        s1 = x_ref[...]                     # bf16 activations (x cast at the boundary)
        woff, boff = 0, 0
        for cell in range(layers):
            in_dim = feat_dim if cell == 0 else hidden
            # preprocess1: p1 = s1 @ W1 + b1   (bf16 operands, f32 accumulate/bias)
            p1 = jnp.dot(s1, wslab(woff, in_dim),
                         preferred_element_type=jnp.float32) + bias(boff)
            woff += in_dim
            boff += 1

            states = [None, p1]             # states[0] (preprocess0) never computed
            for i in range(steps):
                h = states[indices[i]].astype(jnp.bfloat16)
                hw = jnp.dot(h, wslab(woff, hidden),
                             preferred_element_type=jnp.float32)
                # a_ref re-read per dot (no long-lived hoisted value -> less vreg pressure)
                s = jnp.dot(a_ref[...], hw.astype(jnp.bfloat16),
                            preferred_element_type=jnp.float32) + bias(boff)
                woff += hidden
                boff += 1
                states.append(s)

            # 'add' combine — mirrors the PyTorch loop exactly (tmp starts at states[2]
            # and the loop re-adds states[2], i.e. out = 2*s2 + s3 + ...). Intentional:
            # do NOT "fix" this or it diverges from MicroGNN semantics.  Stays f32.
            tmp = states[2]
            for i in range(2, len(states)):
                tmp = tmp + states[i]

            s1 = tmp.astype(jnp.bfloat16)   # next cell's (and classifier's) dot operand

        # classifier, zero-padded to `hidden` columns -> unmasked lane-dense store
        out_ref[...] = jnp.dot(s1, wslab(woff, hidden),
                               preferred_element_type=jnp.float32) + bias(boff)

    return kernel


# ------------------------------------------------------------------------ pallas wrapper
def micro_gnn_forward(params, x, a_norm, indices):
    """Single fused pallas_call for the full MicroGNN forward pass (4 input DMAs)."""
    cells = params["cells"]
    layers = len(cells)
    steps = cells[0]["Wg"].shape[0]
    indices = tuple(int(i) for i in indices)

    feat = cells[0]["W1"].shape[0]
    hidden = cells[0]["W1"].shape[1]
    n = x.shape[0]
    c = params["Wc"].shape[1]
    assert c <= hidden

    # ---- pack weights (bf16) and biases (f32) into two slabs --------------------------
    w_parts, b_parts = [], []
    for cp in cells:
        w_parts.append(cp["W1"])
        b_parts.append(cp["b1"])
        for i in range(steps):
            w_parts.append(cp["Wg"][i])
            b_parts.append(cp["bg"][i])
    w_parts.append(jnp.pad(params["Wc"], ((0, 0), (0, hidden - c))))
    b_parts.append(jnp.pad(params["bc"], ((0, 0), (0, hidden - c))))

    w_slab = jnp.concatenate(w_parts, axis=0).astype(jnp.bfloat16)
    b_slab = jnp.concatenate(b_parts, axis=0).astype(jnp.float32)
    n_bias = b_slab.shape[0]
    n_bias_pad = ((n_bias + 7) // 8) * 8                      # tile-complete sublanes
    b_slab = jnp.pad(b_slab, ((0, n_bias_pad - n_bias), (0, 0)))

    args = [x.astype(jnp.bfloat16), a_norm.astype(jnp.bfloat16), w_slab, b_slab]

    out = pl.pallas_call(
        make_fused_kernel(indices, steps, layers, feat, hidden),
        out_shape=jax.ShapeDtypeStruct((n, hidden), jnp.float32),
        in_specs=[full_spec(a.shape) for a in args],
        out_specs=full_spec((n, hidden)),
        compiler_params=pltpu.CompilerParams(vmem_limit_bytes=32 * 1024 * 1024),
    )(*args)
    return out[:, :c]                                         # drop lane padding


# ---------------------------------------------------------------------------- parameters
def init_linear(key, in_dim, out_dim):
    """PyTorch nn.Linear default init (U(-1/sqrt(in), 1/sqrt(in))), stored as [in, out]."""
    kw, kb = jax.random.split(key)
    bound = 1.0 / (in_dim ** 0.5)
    w = jax.random.uniform(kw, (in_dim, out_dim), jnp.float32, -bound, bound)
    b = jax.random.uniform(kb, (1, out_dim), jnp.float32, -bound, bound)
    return w, b


def init_micro_gnn(key, num_feat, num_classes, num_hidden, layers, steps):
    params = {"cells": []}
    his_dim, cur_dim = num_feat, num_feat
    for _ in range(layers):
        key, k0, k1 = jax.random.split(key, 3)
        w0, b0 = init_linear(k0, his_dim, num_hidden)
        w1, b1 = init_linear(k1, cur_dim, num_hidden)
        wgs, bgs = [], []
        for _ in range(steps):
            key, kg = jax.random.split(key)
            wg, bg = init_linear(kg, num_hidden, num_hidden)
            wgs.append(wg)
            bgs.append(bg)
        params["cells"].append(dict(
            W0=w0, b0=b0, W1=w1, b1=b1,
            Wg=jnp.stack(wgs), bg=jnp.stack(bgs)))
        his_dim = cur_dim
        cur_dim = num_hidden          # 'add' combine -> out_dim (not multiplier*out_dim)
    key, kc = jax.random.split(key)
    params["Wc"], params["bc"] = init_linear(kc, cur_dim, num_classes)
    return params


def normalized_adjacency(edge_index, n):
    """Dense symmetric normalization A_norm = D^-1/2 (A + I) D^-1/2 (plain-JAX glue)."""
    a = jnp.zeros((n, n), jnp.float32)
    a = a.at[edge_index[0], edge_index[1]].set(1.0)
    a = a + jnp.eye(n, dtype=jnp.float32)
    deg = a.sum(axis=1)
    d_inv_sqrt = 1.0 / jnp.sqrt(deg)
    return a * d_inv_sqrt[:, None] * d_inv_sqrt[None, :]


# --------------------------------------------------------------------- pure-JAX reference
def micro_gnn_reference(params, x, a_norm, indices, mixed=False):
    """mixed=False: full f32 reference.  mixed=True: same bf16-operand math as the kernel."""
    cast = (lambda t: t.astype(jnp.bfloat16)) if mixed else (lambda t: t)

    def dot(a, b):
        return jnp.dot(cast(a), cast(b), preferred_element_type=jnp.float32)

    def cell_ref(p, s0, s1):
        p0 = dot(s0, p["W0"]) + p["b0"]      # dead for indices=(1,2); kept for fidelity
        p1 = dot(s1, p["W1"]) + p["b1"]
        states = [p0, p1]
        for i in range(p["Wg"].shape[0]):
            h = states[indices[i]]
            states.append(dot(a_norm, dot(h, p["Wg"][i])) + p["bg"][i])
        tmp = states[2]
        for i in range(2, len(states)):
            tmp = tmp + states[i]
        return tmp

    s0 = s1 = x
    for cp in params["cells"]:
        s0, s1 = s1, cell_ref(cp, s0, s1)
    return dot(s1, params["Wc"]) + params["bc"]


# ---------------------------------------------------------------------------------- main
if __name__ == "__main__":
    # Lane-dense hidden dim (H = 128); N, F kept small.
    N, F, H, C = 128, 32, 128, 8        # nodes, features, hidden, classes
    LAYERS, STEPS = 3, 2
    INDICES = (1, 2)                    # action = [1,'gcn', 2,'gcn', 'relu', 'add']

    key = jax.random.PRNGKey(0)
    k_x, k_p = jax.random.split(key)

    x = jax.random.normal(k_x, (N, F), jnp.float32)
    # deterministic ring graph, both directions -> edge_index [2, 2N]
    src = jnp.arange(N, dtype=jnp.int32)
    dst = (src + 1) % N
    edge_index = jnp.concatenate(
        [jnp.stack([src, dst]), jnp.stack([dst, src])], axis=1)

    a_norm = normalized_adjacency(edge_index, N)
    params = init_micro_gnn(k_p, F, C, H, LAYERS, STEPS)

    logits = micro_gnn_forward(params, x, a_norm, INDICES)
    logits = jax.block_until_ready(logits)
    assert logits.shape == (N, C)

    # Tight check against a reference doing the identical bf16-operand / f32-accum math.
    ref_mixed = micro_gnn_reference(params, x, a_norm, INDICES, mixed=True)
    assert jnp.allclose(logits, ref_mixed, atol=1e-2, rtol=1e-2), float(
        jnp.max(jnp.abs(logits - ref_mixed)))

    # Loose semantic check against the full-f32 reference (bf16 operand rounding).
    ref_f32 = micro_gnn_reference(params, x, a_norm, INDICES, mixed=False)
    assert jnp.allclose(logits, ref_f32, atol=1e-1, rtol=1e-1), float(
        jnp.max(jnp.abs(logits - ref_f32)))

    print("KERNEL_OK")
</pallas_src>

<mosaic_0001>
module attributes {stable_mosaic.version = 11 : i64} {
  func.func @kernel(%arg0: memref<128x32xbf16, #tpu.memory_space<vmem>>, %arg1: memref<128x128xbf16, #tpu.memory_space<vmem>>, %arg2: memref<1184x128xbf16, #tpu.memory_space<vmem>>, %arg3: memref<16x128xf32, #tpu.memory_space<vmem>>, %arg4: memref<128x128xf32, #tpu.memory_space<vmem>>) attributes {dimension_semantics = [], scalar_prefetch = 0 : i64, scratch_operands = 0 : i64, tpu.core_type = #tpu.core_type<tc>} {
    %c0 = arith.constant 0 : index
    %c0_0 = arith.constant 0 : index
    %0 = vector.load %arg0[%c0, %c0_0] : memref<128x32xbf16, #tpu.memory_space<vmem>>, vector<128x32xbf16>
    %c0_1 = arith.constant 0 : index
    %c0_2 = arith.constant 0 : index
    %1 = vector.load %arg2[%c0_1, %c0_2] : memref<1184x128xbf16, #tpu.memory_space<vmem>>, vector<32x128xbf16>
    %cst = arith.constant dense<0.000000e+00> : vector<128x128xf32>
    %2 = tpu.matmul %0, %1, %cst {dimension_numbers = #tpu.dot_dimension_numbers<[1], [0], [0], [1], [0, 0, 1, 1], [], []>} : vector<128x32xbf16>, vector<32x128xbf16>, vector<128x128xf32> -> vector<128x128xf32>
    %c0_3 = arith.constant 0 : index
    %c0_4 = arith.constant 0 : index
    %3 = vector.load %arg3[%c0_3, %c0_4] : memref<16x128xf32, #tpu.memory_space<vmem>>, vector<1x128xf32>
    %4 = vector.broadcast %3 : vector<1x128xf32> to vector<128x128xf32>
    %5 = arith.addf %2, %4 : vector<128x128xf32>
    %6 = arith.truncf %5 : vector<128x128xf32> to vector<128x128xbf16>
    %c32 = arith.constant 32 : index
    %c0_5 = arith.constant 0 : index
    %7 = vector.load %arg2[%c32, %c0_5] : memref<1184x128xbf16, #tpu.memory_space<vmem>>, vector<128x128xbf16>
    %cst_6 = arith.constant dense<0.000000e+00> : vector<128x128xf32>
    %8 = tpu.matmul %6, %7, %cst_6 {dimension_numbers = #tpu.dot_dimension_numbers<[1], [0], [0], [1], [0, 0, 1, 1], [], []>} : vector<128x128xbf16>, vector<128x128xbf16>, vector<128x128xf32> -> vector<128x128xf32>
    %c0_7 = arith.constant 0 : index
    %c0_8 = arith.constant 0 : index
    %9 = vector.load %arg1[%c0_7, %c0_8] : memref<128x128xbf16, #tpu.memory_space<vmem>>, vector<128x128xbf16>
    %10 = arith.truncf %8 : vector<128x128xf32> to vector<128x128xbf16>
    %cst_9 = arith.constant dense<0.000000e+00> : vector<128x128xf32>
    %11 = tpu.matmul %9, %10, %cst_9 {dimension_numbers = #tpu.dot_dimension_numbers<[1], [0], [0], [1], [0, 0, 1, 1], [], []>} : vector<128x128xbf16>, vector<128x128xbf16>, vector<128x128xf32> -> vector<128x128xf32>
    %c1 = arith.constant 1 : index
    %c0_10 = arith.constant 0 : index
    %12 = vector.load %arg3[%c1, %c0_10] : memref<16x128xf32, #tpu.memory_space<vmem>>, vector<1x128xf32>
    %13 = vector.broadcast %12 : vector<1x128xf32> to vector<128x128xf32>
    %14 = arith.addf %11, %13 : vector<128x128xf32>
    %15 = arith.truncf %14 : vector<128x128xf32> to vector<128x128xbf16>
    %c160 = arith.constant 160 : index
    %c0_11 = arith.constant 0 : index
    %16 = vector.load %arg2[%c160, %c0_11] : memref<1184x128xbf16, #tpu.memory_space<vmem>>, vector<128x128xbf16>
    %cst_12 = arith.constant dense<0.000000e+00> : vector<128x128xf32>
    %17 = tpu.matmul %15, %16, %cst_12 {dimension_numbers = #tpu.dot_dimension_numbers<[1], [0], [0], [1], [0, 0, 1, 1], [], []>} : vector<128x128xbf16>, vector<128x128xbf16>, vector<128x128xf32> -> vector<128x128xf32>
    %c0_13 = arith.constant 0 : index
    %c0_14 = arith.constant 0 : index
    %18 = vector.load %arg1[%c0_13, %c0_14] : memref<128x128xbf16, #tpu.memory_space<vmem>>, vector<128x128xbf16>
    %19 = arith.truncf %17 : vector<128x128xf32> to vector<128x128xbf16>
    %cst_15 = arith.constant dense<0.000000e+00> : vector<128x128xf32>
    %20 = tpu.matmul %18, %19, %cst_15 {dimension_numbers = #tpu.dot_dimension_numbers<[1], [0], [0], [1], [0, 0, 1, 1], [], []>} : vector<128x128xbf16>, vector<128x128xbf16>, vector<128x128xf32> -> vector<128x128xf32>
    %c2 = arith.constant 2 : index
    %c0_16 = arith.constant 0 : index
    %21 = vector.load %arg3[%c2, %c0_16] : memref<16x128xf32, #tpu.memory_space<vmem>>, vector<1x128xf32>
    %22 = vector.broadcast %21 : vector<1x128xf32> to vector<128x128xf32>
    %23 = arith.addf %20, %22 : vector<128x128xf32>
    %24 = arith.addf %14, %14 : vector<128x128xf32>
    %25 = arith.addf %24, %23 : vector<128x128xf32>
    %26 = arith.truncf %25 : vector<128x128xf32> to vector<128x128xbf16>
    %c288 = arith.constant 288 : index
    %c0_17 = arith.constant 0 : index
    %27 = vector.load %arg2[%c288, %c0_17] : memref<1184x128xbf16, #tpu.memory_space<vmem>>, vector<128x128xbf16>
    %cst_18 = arith.constant dense<0.000000e+00> : vector<128x128xf32>
    %28 = tpu.matmul %26, %27, %cst_18 {dimension_numbers = #tpu.dot_dimension_numbers<[1], [0], [0], [1], [0, 0, 1, 1], [], []>} : vector<128x128xbf16>, vector<128x128xbf16>, vector<128x128xf32> -> vector<128x128xf32>
    %c3 = arith.constant 3 : index
    %c0_19 = arith.constant 0 : index
    %29 = vector.load %arg3[%c3, %c0_19] : memref<16x128xf32, #tpu.memory_space<vmem>>, vector<1x128xf32>
    %30 = vector.broadcast %29 : vector<1x128xf32> to vector<128x128xf32>
    %31 = arith.addf %28, %30 : vector<128x128xf32>
    %32 = arith.truncf %31 : vector<128x128xf32> to vector<128x128xbf16>
    %c416 = arith.constant 416 : index
    %c0_20 = arith.constant 0 : index
    %33 = vector.load %arg2[%c416, %c0_20] : memref<1184x128xbf16, #tpu.memory_space<vmem>>, vector<128x128xbf16>
    %cst_21 = arith.constant dense<0.000000e+00> : vector<128x128xf32>
    %34 = tpu.matmul %32, %33, %cst_21 {dimension_numbers = #tpu.dot_dimension_numbers<[1], [0], [0], [1], [0, 0, 1, 1], [], []>} : vector<128x128xbf16>, vector<128x128xbf16>, vector<128x128xf32> -> vector<128x128xf32>
    %c0_22 = arith.constant 0 : index
    %c0_23 = arith.constant 0 : index
    %35 = vector.load %arg1[%c0_22, %c0_23] : memref<128x128xbf16, #tpu.memory_space<vmem>>, vector<128x128xbf16>
    %36 = arith.truncf %34 : vector<128x128xf32> to vector<128x128xbf16>
    %cst_24 = arith.constant dense<0.000000e+00> : vector<128x128xf32>
    %37 = tpu.matmul %35, %36, %cst_24 {dimension_numbers = #tpu.dot_dimension_numbers<[1], [0], [0], [1], [0, 0, 1, 1], [], []>} : vector<128x128xbf16>, vector<128x128xbf16>, vector<128x128xf32> -> vector<128x128xf32>
    %c4 = arith.constant 4 : index
    %c0_25 = arith.constant 0 : index
    %38 = vector.load %arg3[%c4, %c0_25] : memref<16x128xf32, #tpu.memory_space<vmem>>, vector<1x128xf32>
    %39 = vector.broadcast %38 : vector<1x128xf32> to vector<128x128xf32>
    %40 = arith.addf %37, %39 : vector<128x128xf32>
    %41 = arith.truncf %40 : vector<128x128xf32> to vector<128x128xbf16>
    %c544 = arith.constant 544 : index
    %c0_26 = arith.constant 0 : index
    %42 = vector.load %arg2[%c544, %c0_26] : memref<1184x128xbf16, #tpu.memory_space<vmem>>, vector<128x128xbf16>
    %cst_27 = arith.constant dense<0.000000e+00> : vector<128x128xf32>
    %43 = tpu.matmul %41, %42, %cst_27 {dimension_numbers = #tpu.dot_dimension_numbers<[1], [0], [0], [1], [0, 0, 1, 1], [], []>} : vector<128x128xbf16>, vector<128x128xbf16>, vector<128x128xf32> -> vector<128x128xf32>
    %c0_28 = arith.constant 0 : index
    %c0_29 = arith.constant 0 : index
    %44 = vector.load %arg1[%c0_28, %c0_29] : memref<128x128xbf16, #tpu.memory_space<vmem>>, vector<128x128xbf16>
    %45 = arith.truncf %43 : vector<128x128xf32> to vector<128x128xbf16>
    %cst_30 = arith.constant dense<0.000000e+00> : vector<128x128xf32>
    %46 = tpu.matmul %44, %45, %cst_30 {dimension_numbers = #tpu.dot_dimension_numbers<[1], [0], [0], [1], [0, 0, 1, 1], [], []>} : vector<128x128xbf16>, vector<128x128xbf16>, vector<128x128xf32> -> vector<128x128xf32>
    %c5 = arith.constant 5 : index
    %c0_31 = arith.constant 0 : index
    %47 = vector.load %arg3[%c5, %c0_31] : memref<16x128xf32, #tpu.memory_space<vmem>>, vector<1x128xf32>
    %48 = vector.broadcast %47 : vector<1x128xf32> to vector<128x128xf32>
    %49 = arith.addf %46, %48 : vector<128x128xf32>
    %50 = arith.addf %40, %40 : vector<128x128xf32>
    %51 = arith.addf %50, %49 : vector<128x128xf32>
    %52 = arith.truncf %51 : vector<128x128xf32> to vector<128x128xbf16>
    %c672 = arith.constant 672 : index
    %c0_32 = arith.constant 0 : index
    %53 = vector.load %arg2[%c672, %c0_32] : memref<1184x128xbf16, #tpu.memory_space<vmem>>, vector<128x128xbf16>
    %cst_33 = arith.constant dense<0.000000e+00> : vector<128x128xf32>
    %54 = tpu.matmul %52, %53, %cst_33 {dimension_numbers = #tpu.dot_dimension_numbers<[1], [0], [0], [1], [0, 0, 1, 1], [], []>} : vector<128x128xbf16>, vector<128x128xbf16>, vector<128x128xf32> -> vector<128x128xf32>
    %c6 = arith.constant 6 : index
    %c0_34 = arith.constant 0 : index
    %55 = vector.load %arg3[%c6, %c0_34] : memref<16x128xf32, #tpu.memory_space<vmem>>, vector<1x128xf32>
    %56 = vector.broadcast %55 : vector<1x128xf32> to vector<128x128xf32>
    %57 = arith.addf %54, %56 : vector<128x128xf32>
    %58 = arith.truncf %57 : vector<128x128xf32> to vector<128x128xbf16>
    %c800 = arith.constant 800 : index
    %c0_35 = arith.constant 0 : index
    %59 = vector.load %arg2[%c800, %c0_35] : memref<1184x128xbf16, #tpu.memory_space<vmem>>, vector<128x128xbf16>
    %cst_36 = arith.constant dense<0.000000e+00> : vector<128x128xf32>
    %60 = tpu.matmul %58, %59, %cst_36 {dimension_numbers = #tpu.dot_dimension_numbers<[1], [0], [0], [1], [0, 0, 1, 1], [], []>} : vector<128x128xbf16>, vector<128x128xbf16>, vector<128x128xf32> -> vector<128x128xf32>
    %c0_37 = arith.constant 0 : index
    %c0_38 = arith.constant 0 : index
    %61 = vector.load %arg1[%c0_37, %c0_38] : memref<128x128xbf16, #tpu.memory_space<vmem>>, vector<128x128xbf16>
    %62 = arith.truncf %60 : vector<128x128xf32> to vector<128x128xbf16>
    %cst_39 = arith.constant dense<0.000000e+00> : vector<128x128xf32>
    %63 = tpu.matmul %61, %62, %cst_39 {dimension_numbers = #tpu.dot_dimension_numbers<[1], [0], [0], [1], [0, 0, 1, 1], [], []>} : vector<128x128xbf16>, vector<128x128xbf16>, vector<128x128xf32> -> vector<128x128xf32>
    %c7 = arith.constant 7 : index
    %c0_40 = arith.constant 0 : index
    %64 = vector.load %arg3[%c7, %c0_40] : memref<16x128xf32, #tpu.memory_space<vmem>>, vector<1x128xf32>
    %65 = vector.broadcast %64 : vector<1x128xf32> to vector<128x128xf32>
    %66 = arith.addf %63, %65 : vector<128x128xf32>
    %67 = arith.truncf %66 : vector<128x128xf32> to vector<128x128xbf16>
    %c928 = arith.constant 928 : index
    %c0_41 = arith.constant 0 : index
    %68 = vector.load %arg2[%c928, %c0_41] : memref<1184x128xbf16, #tpu.memory_space<vmem>>, vector<128x128xbf16>
    %cst_42 = arith.constant dense<0.000000e+00> : vector<128x128xf32>
    %69 = tpu.matmul %67, %68, %cst_42 {dimension_numbers = #tpu.dot_dimension_numbers<[1], [0], [0], [1], [0, 0, 1, 1], [], []>} : vector<128x128xbf16>, vector<128x128xbf16>, vector<128x128xf32> -> vector<128x128xf32>
    %c0_43 = arith.constant 0 : index
    %c0_44 = arith.constant 0 : index
    %70 = vector.load %arg1[%c0_43, %c0_44] : memref<128x128xbf16, #tpu.memory_space<vmem>>, vector<128x128xbf16>
    %71 = arith.truncf %69 : vector<128x128xf32> to vector<128x128xbf16>
    %cst_45 = arith.constant dense<0.000000e+00> : vector<128x128xf32>
    %72 = tpu.matmul %70, %71, %cst_45 {dimension_numbers = #tpu.dot_dimension_numbers<[1], [0], [0], [1], [0, 0, 1, 1], [], []>} : vector<128x128xbf16>, vector<128x128xbf16>, vector<128x128xf32> -> vector<128x128xf32>
    %c8 = arith.constant 8 : index
    %c0_46 = arith.constant 0 : index
    %73 = vector.load %arg3[%c8, %c0_46] : memref<16x128xf32, #tpu.memory_space<vmem>>, vector<1x128xf32>
    %74 = vector.broadcast %73 : vector<1x128xf32> to vector<128x128xf32>
    %75 = arith.addf %72, %74 : vector<128x128xf32>
    %76 = arith.addf %66, %66 : vector<128x128xf32>
    %77 = arith.addf %76, %75 : vector<128x128xf32>
    %78 = arith.truncf %77 : vector<128x128xf32> to vector<128x128xbf16>
    %c1056 = arith.constant 1056 : index
    %c0_47 = arith.constant 0 : index
    %79 = vector.load %arg2[%c1056, %c0_47] : memref<1184x128xbf16, #tpu.memory_space<vmem>>, vector<128x128xbf16>
    %cst_48 = arith.constant dense<0.000000e+00> : vector<128x128xf32>
    %80 = tpu.matmul %78, %79, %cst_48 {dimension_numbers = #tpu.dot_dimension_numbers<[1], [0], [0], [1], [0, 0, 1, 1], [], []>} : vector<128x128xbf16>, vector<128x128xbf16>, vector<128x128xf32> -> vector<128x128xf32>
    %c9 = arith.constant 9 : index
    %c0_49 = arith.constant 0 : index
    %81 = vector.load %arg3[%c9, %c0_49] : memref<16x128xf32, #tpu.memory_space<vmem>>, vector<1x128xf32>
    %82 = vector.broadcast %81 : vector<1x128xf32> to vector<128x128xf32>
    %83 = arith.addf %80, %82 : vector<128x128xf32>
    %c0_50 = arith.constant 0 : index
    %c0_51 = arith.constant 0 : index
    %84 = vector.load %arg4[%c0_50, %c0_51] : memref<128x128xf32, #tpu.memory_space<vmem>>, vector<128x128xf32>
    tpu.vector_store %arg4[%c0_50, %c0_51], %83 {strides = array<i32>} : memref<128x128xf32, #tpu.memory_space<vmem>>, vector<128x128xf32>,
    return
  }
}

</mosaic_0001>

<bundles_post_ra>
// kernel: tpu_custom_call.1
= control target key start
LH: loop header
LB: loop body
LE: loop exit
PB: predicated region body
PF: predicated region fallthrough
CT: control target
= control target key end

     0   :  { %9 = vsyncpa [#allocation3], 0  ;;  %s2882_s0 = inlined_call_operand.vmem [shape: bf16[128,32], index: 0, kind: input, shape index: {}]   ;;  %s2883_s1 = inlined_call_operand.vmem [shape: bf16[128,128], index: 1, kind: input, shape index: {}]   ;;  %s2884_s2 = inlined_call_operand.hbm [shape: bf16[1184,128], index: 2, kind: input, shape index: {}]   ;;  %s2885_s3 = inlined_call_operand.vmem [shape: f32[16,128], index: 3, kind: input, shape index: {}]   ;;  %s2886_s4 = inlined_call_operand.hbm [shape: f32[128,128], index: 4, kind: output, shape index: {}]  }
   0x1   :  { %10 = vsyncpa [#allocation4], 0  ;;  %s19_s17 = sshll.u32 %s2884_s2, 4  ;;  %s2361_s18 = smov [#allocation2]   ;;  %s20_s17 = int_to_ptr.hbm [resolvable:$true] %s19_s17 }
   0x2   :  { %s21_s19 = sshll.u32 %s2361_s18, 4  ;;  %s2362_s20 = smov 64   ;;  %s22_s19 = int_to_ptr.vmem [resolvable:$true] %s21_s19 }
   0x3   :  { %s2363_s21 = smov 4  }
   0x4   :  { %27 = dma.hbm_to_vmem [thread:$0]  %s20_s17, 9472, %s22_s19, [#allocation3], %s2362_s20, %s2362_s20, %s2363_s21  }
   0x5   :  { %2357 = dma.done.wait [#allocation3], 9472  }
   0x6   :  { %2358 = vsyncadd [#allocation3], 4294957824  ;;  %v2204_v0 = vld [vmem:[#allocation2 + $0x8] sm:$0xff]  ;;  %v2203_v1 = vld [vmem:[#allocation2] sm:$0xff]  ;;  %vm109_vm0 = vcmask 261120   ;;  %s1814_s9 = sshll.u32 %s2886_s4, 4  ;;  %s1815_s9 = int_to_ptr.hbm [resolvable:$true] %s1814_s9 }
   0x7   :  { %140 = vmatpush.bf16.msra.mxu0 %v2204_v0  ;;  %v2195_v2 = vld [vmem:[%s2882_s0] sm:$0xff]  ;;  %v2196_v3 = vld [vmem:[%s2882_s0 + $0x8] sm:$0xff]  ;;  %v2197_v4 = vld [vmem:[%s2882_s0 + $0x10] sm:$0xff]  ;;  %s2365_s10 = smov 128   ;;  %s2366_s11 = smov 8  }
   0x8   :  { %v2198_v5 = vld [vmem:[%s2882_s0 + $0x18] sm:$0xff]  ;;  %v2199_v6 = vld [vmem:[%s2882_s0 + $0x20] sm:$0xff]  ;;  %v2212_v7 = vld [vmem:[#allocation2 + $0x48] sm:$0xff] }
   0x9   :  { %255 = vmatpush.bf16.msra.mxu1 %v2212_v7  ;;  %v2211_v8 = vld [vmem:[#allocation2 + $0x40] sm:$0xff]  ;;  %v2200_v9 = vld [vmem:[%s2882_s0 + $0x28] sm:$0xff]  ;;  %v2210_v10 = vld [vmem:[#allocation2 + $0x38] sm:$0xff] }
   0xa   :  { %v2209_v11 = vld [vmem:[#allocation2 + $0x30] sm:$0xff]  ;;  %v2208_v12 = vld [vmem:[#allocation2 + $0x28] sm:$0xff]  ;;  %v2207_v14 = vld [vmem:[#allocation2 + $0x20] sm:$0xff] }
   0xb   :  { %141 = vmatpush.bf16.msra.mxu0 %v2203_v1  ;;  %v2201_v13 = vld [vmem:[%s2882_s0 + $0x30] sm:$0xff]  ;;  %v2206_v15 = vld [vmem:[#allocation2 + $0x18] sm:$0xff]  ;;  %v2291_v19 = vld [vmem:[%s2885_s3] ss:$0 sm:$0xff] }
   0xc   :  { %v2205_v16 = vld [vmem:[#allocation2 + $0x10] sm:$0xff]  ;;  %v2202_v17 = vld [vmem:[%s2882_s0 + $0x38] sm:$0xff] }
   0xd   :  { %256 = vmatpush.bf16.msra.mxu1 %v2211_v8 }
   0xe   :  { %1867 = vmatmul.msk.bf16.vlgmr.msra.gmra.mxu0 %vm109_vm0, %v2195_v2 }
  0x11   :  { %257 = vmatpush.bf16.msra.mxu1 %v2210_v10 }
  0x15   :  { %258 = vmatpush.bf16.msra.mxu1 %v2209_v11 }
  0x19   :  { %259 = vmatpush.bf16.msra.mxu1 %v2208_v12 }
  0x1d   :  { %260 = vmatpush.bf16.msra.mxu1 %v2207_v14 }
  0x1e   :  { %1868 = vmatmul.msk.bf16.gmra.mxu0 %vm109_vm0, %v2196_v3 }
  0x21   :  { %261 = vmatpush.bf16.msra.mxu1 %v2206_v15 }
  0x25   :  { %262 = vmatpush.bf16.msra.mxu1 %v2205_v16 }
  0x2e   :  { %1869 = vmatmul.msk.bf16.gmra.mxu0 %vm109_vm0, %v2197_v4 }
  0x3e   :  { %1870 = vmatmul.msk.bf16.gmra.mxu0 %vm109_vm0, %v2198_v5 }
  0x4e   :  { %1871 = vmatmul.msk.bf16.gmra.mxu0 %vm109_vm0, %v2199_v6 }
  0x5e   :  { %1872 = vmatmul.msk.bf16.gmra.mxu0 %vm109_vm0, %v2200_v9 }
  0x6e   :  { %1873 = vmatmul.msk.bf16.gmra.mxu0 %vm109_vm0, %v2201_v13 }
  0x7e   :  { %1874 = vmatmul.msk.bf16.gmra.mxu0 %vm109_vm0, %v2202_v17 }
  0x8b   :  { %v143_v18 = vpop.f32.mrf.mxu0 }
  0x8c   :  { %v144_v21 = vadd.f32 %v2291_v19, %v143_v18 }
  0x93   :  { %v145_v20 = vpop.f32.mrf.mxu0 }
  0x94   :  { %v146_v22 = vadd.f32 %v2291_v19, %v145_v20  ;;  %v2439_v20 = vld [vmem:[%s2883_s1 + $0x8] sm:$0xff] }
  0x96   :  { %v183_v23 = vpack.c.bf16 %v146_v22, %v144_v21  ;;  %v2445_v21 = vld [vmem:[%s2883_s1 + $0x10] sm:$0xff]  ;;  %v2451_v22 = vld [vmem:[%s2883_s1 + $0x18] sm:$0xff] }
  0x98   :  { %263 = vmatmul.bf16.vlgmr.msra.gmra.mxu1 %v183_v23  ;;  %v2457_v23 = vld [vmem:[%s2883_s1 + $0x20] sm:$0xff] }
  0x9b   :  { %v148_v24 = vpop.f32.mrf.mxu0 }
  0x9c   :  { %v149_v26 = vadd.f32 %v2291_v19, %v148_v24  ;;  %v2463_v24 = vld [vmem:[%s2883_s1 + $0x28] sm:$0xff] }
  0xa3   :  { %v150_v25 = vpop.f32.mrf.mxu0 }
  0xa4   :  { %v151_v27 = vadd.f32 %v2291_v19, %v150_v25  ;;  %v2228_v25 = vld [vmem:[#allocation2 + $0x88] sm:$0xff] }
  0xa5   :  { %499 = vmatpush.bf16.msra.mxu3 %v2228_v25 }
  0xa6   :  { %v184_v28 = vpack.c.bf16 %v151_v27, %v149_v26  ;;  %v2227_v26 = vld [vmem:[#allocation2 + $0x80] sm:$0xff]  ;;  %v2226_v27 = vld [vmem:[#allocation2 + $0x78] sm:$0xff] }
  0xa8   :  { %268 = vmatmul.bf16.gmra.mxu1 %v184_v28  ;;  %v2225_v28 = vld [vmem:[#allocation2 + $0x70] sm:$0xff] }
  0xa9   :  { %500 = vmatpush.bf16.msra.mxu3 %v2227_v26 }
  0xab   :  { %v153_v29 = vpop.f32.mrf.mxu0 }
  0xac   :  { %v154_v31 = vadd.f32 %v2291_v19, %v153_v29  ;;  %v2469_v29 = vld [vmem:[%s2883_s1 + $0x30] sm:$0xff] }
  0xad   :  { %501 = vmatpush.bf16.msra.mxu3 %v2226_v27 }
  0xb1   :  { %502 = vmatpush.bf16.msra.mxu3 %v2225_v28 }
  0xb3   :  { %v155_v30 = vpop.f32.mrf.mxu0 }
  0xb4   :  { %v156_v32 = vadd.f32 %v2291_v19, %v155_v30  ;;  %v2224_v30 = vld [vmem:[#allocation2 + $0x68] sm:$0xff] }
  0xb5   :  { %503 = vmatpush.bf16.msra.mxu3 %v2224_v30 }
  0xb6   :  { %v185_v33 = vpack.c.bf16 %v156_v32, %v154_v31  ;;  %v2223_v31 = vld [vmem:[#allocation2 + $0x60] sm:$0xff]  ;;  %v2222_v32 = vld [vmem:[#allocation2 + $0x58] sm:$0xff] }
  0xb8   :  { %273 = vmatmul.bf16.gmra.mxu1 %v185_v33  ;;  %v2221_v33 = vld [vmem:[#allocation2 + $0x50] sm:$0xff] }
  0xb9   :  { %504 = vmatpush.bf16.msra.mxu3 %v2223_v31 }
  0xbb   :  { %v158_v34 = vpop.f32.mrf.mxu0 }
  0xbc   :  { %v159_v36 = vadd.f32 %v2291_v19, %v158_v34  ;;  %v2475_v34 = vld [vmem:[%s2883_s1 + $0x38] sm:$0xff] }
  0xbd   :  { %505 = vmatpush.bf16.msra.mxu3 %v2222_v32 }
  0xc1   :  { %506 = vmatpush.bf16.msra.mxu3 %v2221_v33 }
  0xc3   :  { %v160_v35 = vpop.f32.mrf.mxu0 }
  0xc4   :  { %v161_v37 = vadd.f32 %v2291_v19, %v160_v35 }
  0xc6   :  { %v186_v38 = vpack.c.bf16 %v161_v37, %v159_v36  ;;  %v2292_v36 = vld [vmem:[%s2885_s3 + $0x1] ss:$0 sm:$0xff] }
  0xc8   :  { %278 = vmatmul.bf16.gmra.mxu1 %v186_v38 }
  0xcb   :  { %v163_v39 = vpop.f32.mrf.mxu0 }
  0xcc   :  { %v164_v41 = vadd.f32 %v2291_v19, %v163_v39 }
  0xd3   :  { %v165_v40 = vpop.f32.mrf.mxu0 }
  0xd4   :  { %v166_v42 = vadd.f32 %v2291_v19, %v165_v40 }
  0xd6   :  { %v187_v43 = vpack.c.bf16 %v166_v42, %v164_v41 }
  0xd8   :  { %283 = vmatmul.bf16.gmra.mxu1 %v187_v43 }
  0xdb   :  { %v168_v44 = vpop.f32.mrf.mxu0 }
  0xdc   :  { %v169_v46 = vadd.f32 %v2291_v19, %v168_v44 }
  0xe3   :  { %v170_v45 = vpop.f32.mrf.mxu0 }
  0xe4   :  { %v171_v47 = vadd.f32 %v2291_v19, %v170_v45 }
  0xe6   :  { %v188_v48 = vpack.c.bf16 %v171_v47, %v169_v46 }
  0xe8   :  { %288 = vmatmul.bf16.gmra.mxu1 %v188_v48 }
  0xeb   :  { %v173_v49 = vpop.f32.mrf.mxu0 }
  0xec   :  { %v174_v51 = vadd.f32 %v2291_v19, %v173_v49 }
  0xf3   :  { %v175_v50 = vpop.f32.mrf.mxu0 }
  0xf4   :  { %v176_v52 = vadd.f32 %v2291_v19, %v175_v50 }
  0xf6   :  { %v189_v53 = vpack.c.bf16 %v176_v52, %v174_v51 }
  0xf8   :  { %293 = vmatmul.bf16.gmra.mxu1 %v189_v53 }
  0xfb   :  { %v178_v54 = vpop.f32.mrf.mxu0 }
  0xfc   :  { %v179_v56 = vadd.f32 %v2291_v19, %v178_v54 }
 0x103   :  { %v180_v55 = vpop.f32.mrf.mxu0 }
 0x104   :  { %v181_v57 = vadd.f32 %v2291_v19, %v180_v55  ;;  %v2433_v19 = vld [vmem:[%s2883_s1] sm:$0xff] }
 0x106   :  { %v190_v58 = vpack.c.bf16 %v181_v57, %v179_v56 }
 0x108   :  { %298 = vmatmul.bf16.gmra.mxu1 %v190_v58 }
 0x115   :  { %v264_v59 = vpop.f32.mrf.mxu1 }
 0x11d   :  { %v266_v60 = vpop.f32.mrf.mxu1 }
 0x11e   :  { %v320_v18 = vpack.c.bf16 %v266_v60, %v264_v59 }
 0x125   :  { %v269_v61 = vpop.f32.mrf.mxu1 }
 0x12d   :  { %v271_v62 = vpop.f32.mrf.mxu1 }
 0x12e   :  { %v321_v17 = vpack.c.bf16 %v271_v62, %v269_v61 }
 0x135   :  { %v274_v63 = vpop.f32.mrf.mxu1 }
 0x13d   :  { %v276_v0 = vpop.f32.mrf.mxu1 }
 0x13e   :  { %v322_v16 = vpack.c.bf16 %v276_v0, %v274_v63 }
 0x145   :  { %v279_v1 = vpop.f32.mrf.mxu1 }
 0x14d   :  { %v281_v2 = vpop.f32.mrf.mxu1 }
 0x14e   :  { %v323_v15 = vpack.c.bf16 %v281_v2, %v279_v1 }
 0x155   :  { %v284_v3 = vpop.f32.mrf.mxu1 }
 0x15d   :  { %v286_v4 = vpop.f32.mrf.mxu1 }
 0x15e   :  { %v324_v14 = vpack.c.bf16 %v286_v4, %v284_v3 }
 0x165   :  { %v289_v5 = vpop.f32.mrf.mxu1 }
 0x16d   :  { %v291_v6 = vpop.f32.mrf.mxu1 }
 0x16e   :  { %v325_v13 = vpack.c.bf16 %v291_v6, %v289_v5 }
 0x175   :  { %v294_v7 = vpop.f32.mrf.mxu1 }
 0x17d   :  { %v296_v8 = vpop.f32.mrf.mxu1 }
 0x17e   :  { %v326_v12 = vpack.c.bf16 %v296_v8, %v294_v7 }
 0x185   :  { %v299_v9 = vpop.f32.mrf.mxu1 }
 0x18d   :  { %v301_v10 = vpop.f32.mrf.mxu1 }
 0x18e   :  { %v327_v11 = vpack.c.bf16 %v301_v10, %v299_v9 }
 0x190   :  { %378 = vmatpush.bf16.msra.mxu2 %v327_v11 }
 0x194   :  { %379 = vmatpush.bf16.msra.mxu2 %v326_v12 }
 0x198   :  { %380 = vmatpush.bf16.msra.mxu2 %v325_v13 }
 0x19c   :  { %381 = vmatpush.bf16.msra.mxu2 %v324_v14 }
 0x1a0   :  { %382 = vmatpush.bf16.msra.mxu2 %v323_v15 }
 0x1a4   :  { %383 = vmatpush.bf16.msra.mxu2 %v322_v16 }
 0x1a8   :  { %384 = vmatpush.bf16.msra.mxu2 %v321_v17 }
 0x1ac   :  { %385 = vmatpush.bf16.msra.mxu2 %v320_v18 }
 0x1af   :  { %386 = vmatmul.bf16.vlgmr.msra.gmra.mxu2 %v2433_v19 }
 0x1bf   :  { %391 = vmatmul.bf16.gmra.mxu2 %v2439_v20 }
 0x1cf   :  { %396 = vmatmul.bf16.gmra.mxu2 %v2445_v21 }
 0x1df   :  { %401 = vmatmul.bf16.gmra.mxu2 %v2451_v22 }
 0x1ef   :  { %406 = vmatmul.bf16.gmra.mxu2 %v2457_v23 }
 0x1ff   :  { %411 = vmatmul.bf16.gmra.mxu2 %v2463_v24 }
 0x20f   :  { %416 = vmatmul.bf16.gmra.mxu2 %v2469_v29 }
 0x21f   :  { %421 = vmatmul.bf16.gmra.mxu2 %v2475_v34 }
 0x232   :  { %v387_v35 = vpop.f32.mrf.mxu2 }
 0x233   :  { %v2481_v38 = vadd.f32 %v2292_v36, %v387_v35 }
 0x23a   :  { %v389_v37 = vpop.f32.mrf.mxu2 }
 0x23b   :  { %v2483_v39 = vadd.f32 %v2292_v36, %v389_v37 }
 0x23d   :  { %v427_v40 = vpack.c.bf16 %v2483_v39, %v2481_v38 }
 0x23f   :  { %507 = vmatmul.bf16.vlgmr.msra.gmra.mxu3 %v427_v40 }
 0x242   :  { %v392_v41 = vpop.f32.mrf.mxu2 }
 0x243   :  { %v2487_v43 = vadd.f32 %v2292_v36, %v392_v41 }
 0x24a   :  { %v394_v42 = vpop.f32.mrf.mxu2 }
 0x24b   :  { %v2489_v44 = vadd.f32 %v2292_v36, %v394_v42 }
 0x24d   :  { %v428_v45 = vpack.c.bf16 %v2489_v44, %v2487_v43 }
 0x24f   :  { %512 = vmatmul.bf16.gmra.mxu3 %v428_v45 }
 0x252   :  { %v397_v46 = vpop.f32.mrf.mxu2 }
 0x253   :  { %v2493_v48 = vadd.f32 %v2292_v36, %v397_v46 }
 0x25a   :  { %v399_v47 = vpop.f32.mrf.mxu2 }
 0x25b   :  { %v2495_v49 = vadd.f32 %v2292_v36, %v399_v47 }
 0x25d   :  { %v429_v50 = vpack.c.bf16 %v2495_v49, %v2493_v48 }
 0x25f   :  { %517 = vmatmul.bf16.gmra.mxu3 %v429_v50  ;;  %v2236_v50 = vld [vmem:[#allocation2 + $0xc8] sm:$0xff] }
 0x260   :  { %713 = vmatpush.bf16.msrb.mxu1 %v2236_v50 }
 0x262   :  { %v402_v51 = vpop.f32.mrf.mxu2 }
 0x263   :  { %v2499_v53 = vadd.f32 %v2292_v36, %v402_v51  ;;  %v2235_v51 = vld [vmem:[#allocation2 + $0xc0] sm:$0xff] }
 0x264   :  { %714 = vmatpush.bf16.msrb.mxu1 %v2235_v51 }
 0x26a   :  { %v404_v52 = vpop.f32.mrf.mxu2 }
 0x26b   :  { %v2501_v54 = vadd.f32 %v2292_v36, %v404_v52  ;;  %v2234_v52 = vld [vmem:[#allocation2 + $0xb8] sm:$0xff] }
 0x26c   :  { %715 = vmatpush.bf16.msrb.mxu1 %v2234_v52 }
 0x26d   :  { %v430_v55 = vpack.c.bf16 %v2501_v54, %v2499_v53 }
 0x26f   :  { %522 = vmatmul.bf16.gmra.mxu3 %v430_v55  ;;  %v2233_v55 = vld [vmem:[#allocation2 + $0xb0] sm:$0xff] }
 0x270   :  { %716 = vmatpush.bf16.msrb.mxu1 %v2233_v55 }
 0x272   :  { %v407_v56 = vpop.f32.mrf.mxu2 }
 0x273   :  { %v2505_v58 = vadd.f32 %v2292_v36, %v407_v56  ;;  %v2232_v56 = vld [vmem:[#allocation2 + $0xa8] sm:$0xff] }
 0x274   :  { %717 = vmatpush.bf16.msrb.mxu1 %v2232_v56 }
 0x275   :  { %v615_v52 = vadd.f32 %v2505_v58, %v2505_v58 }
 0x27a   :  { %v409_v57 = vpop.f32.mrf.mxu2 }
 0x27b   :  { %v2507_v59 = vadd.f32 %v2292_v36, %v409_v57  ;;  %v2231_v57 = vld [vmem:[#allocation2 + $0xa0] sm:$0xff] }
 0x27c   :  { %718 = vmatpush.bf16.msrb.mxu1 %v2231_v57 }
 0x27d   :  { %v431_v60 = vpack.c.bf16 %v2507_v59, %v2505_v58  ;;  %v616_v55 = vadd.f32 %v2507_v59, %v2507_v59 }
 0x27f   :  { %527 = vmatmul.bf16.gmra.mxu3 %v431_v60  ;;  %v2230_v60 = vld [vmem:[#allocation2 + $0x98] sm:$0xff] }
 0x280   :  { %719 = vmatpush.bf16.msrb.mxu1 %v2230_v60 }
 0x282   :  { %v412_v61 = vpop.f32.mrf.mxu2 }
 0x283   :  { %v2511_v63 = vadd.f32 %v2292_v36, %v412_v61  ;;  %v2229_v61 = vld [vmem:[#allocation2 + $0x90] sm:$0xff] }
 0x284   :  { %720 = vmatpush.bf16.msrb.mxu1 %v2229_v61 }
 0x28a   :  { %v414_v62 = vpop.f32.mrf.mxu2 }
 0x28b   :  { %v2513_v0 = vadd.f32 %v2292_v36, %v414_v62 }
 0x28d   :  { %v432_v1 = vpack.c.bf16 %v2513_v0, %v2511_v63  ;;  %v618_v58 = vadd.f32 %v2513_v0, %v2513_v0 }
 0x28f   :  { %532 = vmatmul.bf16.gmra.mxu3 %v432_v1  ;;  %v2540_v1 = vld [vmem:[%s2885_s3 + $0x2] ss:$0 sm:$0xff] }
 0x292   :  { %v417_v2 = vpop.f32.mrf.mxu2 }
 0x293   :  { %v2517_v4 = vadd.f32 %v2292_v36, %v417_v2 }
 0x295   :  { %v619_v0 = vadd.f32 %v2517_v4, %v2517_v4 }
 0x29a   :  { %v419_v3 = vpop.f32.mrf.mxu2 }
 0x29b   :  { %v2519_v5 = vadd.f32 %v2292_v36, %v419_v3 }
 0x29d   :  { %v433_v6 = vpack.c.bf16 %v2519_v5, %v2517_v4 }
 0x29f   :  { %537 = vmatmul.bf16.gmra.mxu3 %v433_v6  ;;  %v607_v6 = vadd.f32 %v2481_v38, %v2481_v38 }
 0x2a2   :  { %v422_v7 = vpop.f32.mrf.mxu2 }
 0x2a3   :  { %v2523_v9 = vadd.f32 %v2292_v36, %v422_v7  ;;  %v608_v7 = vadd.f32 %v2483_v39, %v2483_v39 }
 0x2aa   :  { %v424_v8 = vpop.f32.mrf.mxu2 }
 0x2ab   :  { %v2525_v10 = vadd.f32 %v2292_v36, %v424_v8 }
 0x2ad   :  { %v434_v11 = vpack.c.bf16 %v2525_v10, %v2523_v9 }
 0x2af   :  { %542 = vmatmul.bf16.gmra.mxu3 %v434_v11 }
 0x2c2   :  { %v508_v12 = vpop.f32.mrf.mxu3 }
 0x2ca   :  { %v510_v13 = vpop.f32.mrf.mxu3 }
 0x2cb   :  { %v548_v47 = vpack.c.bf16 %v510_v13, %v508_v12 }
 0x2d2   :  { %v513_v14 = vpop.f32.mrf.mxu3 }
 0x2da   :  { %v515_v15 = vpop.f32.mrf.mxu3 }
 0x2db   :  { %v549_v46 = vpack.c.bf16 %v515_v15, %v513_v14 }
 0x2e2   :  { %v518_v16 = vpop.f32.mrf.mxu3 }
 0x2ea   :  { %v520_v17 = vpop.f32.mrf.mxu3 }
 0x2eb   :  { %v550_v45 = vpack.c.bf16 %v520_v17, %v518_v16  ;;  %v609_v17 = vadd.f32 %v2487_v43, %v2487_v43 }
 0x2f2   :  { %v523_v18 = vpop.f32.mrf.mxu3 }
 0x2fa   :  { %v525_v25 = vpop.f32.mrf.mxu3 }
 0x2fb   :  { %v551_v42 = vpack.c.bf16 %v525_v25, %v523_v18  ;;  %v610_v18 = vadd.f32 %v2489_v44, %v2489_v44 }
 0x302   :  { %v528_v26 = vpop.f32.mrf.mxu3 }
 0x30a   :  { %v530_v27 = vpop.f32.mrf.mxu3 }
 0x30b   :  { %v552_v41 = vpack.c.bf16 %v530_v27, %v528_v26 }
 0x312   :  { %v533_v28 = vpop.f32.mrf.mxu3 }
 0x31a   :  { %v535_v30 = vpop.f32.mrf.mxu3 }
 0x31b   :  { %v553_v40 = vpack.c.bf16 %v535_v30, %v533_v28 }
 0x322   :  { %v538_v31 = vpop.f32.mrf.mxu3 }
 0x32a   :  { %v540_v32 = vpop.f32.mrf.mxu3 }
 0x32b   :  { %v554_v37 = vpack.c.bf16 %v540_v32, %v538_v31  ;;  %v611_v31 = vadd.f32 %v2493_v48, %v2493_v48  ;;  %v612_v32 = vadd.f32 %v2495_v49, %v2495_v49 }
 0x332   :  { %v543_v33 = vpop.f32.mrf.mxu3 }
 0x33a   :  { %v545_v35 = vpop.f32.mrf.mxu3 }
 0x33b   :  { %v555_v36 = vpack.c.bf16 %v545_v35, %v543_v33 }
 0x33d   :  { %558 = vmatpush.bf16.msrb.mxu0 %v555_v36 }
 0x341   :  { %559 = vmatpush.bf16.msrb.mxu0 %v554_v37 }
 0x345   :  { %560 = vmatpush.bf16.msrb.mxu0 %v553_v40 }
 0x349   :  { %561 = vmatpush.bf16.msrb.mxu0 %v552_v41  ;;  %v613_v41 = vadd.f32 %v2499_v53, %v2499_v53 }
 0x34d   :  { %562 = vmatpush.bf16.msrb.mxu0 %v551_v42  ;;  %v614_v42 = vadd.f32 %v2501_v54, %v2501_v54 }
 0x351   :  { %563 = vmatpush.bf16.msrb.mxu0 %v550_v45 }
 0x355   :  { %564 = vmatpush.bf16.msrb.mxu0 %v549_v46 }
 0x359   :  { %565 = vmatpush.bf16.msrb.mxu0 %v548_v47 }
 0x35c   :  { %566 = vmatmul.bf16.vlgmr.msrb.gmra.mxu0 %v2433_v19 }
 0x36c   :  { %571 = vmatmul.bf16.gmra.mxu0 %v2439_v20 }
 0x37c   :  { %576 = vmatmul.bf16.gmra.mxu0 %v2445_v21 }
 0x38c   :  { %581 = vmatmul.bf16.gmra.mxu0 %v2451_v22 }
 0x39c   :  { %586 = vmatmul.bf16.gmra.mxu0 %v2457_v23 }
 0x3ac   :  { %591 = vmatmul.bf16.gmra.mxu0 %v2463_v24 }
 0x3bc   :  { %596 = vmatmul.bf16.gmra.mxu0 %v2469_v29 }
 0x3cc   :  { %601 = vmatmul.bf16.gmra.mxu0 %v2475_v34 }
 0x3d9   :  { %v567_v62 = vpop.f32.mrf.mxu0 }
 0x3da   :  { %v568_v2 = vadd.f32 %v2540_v1, %v567_v62 }
 0x3dc   :  { %v623_v11 = vadd.f32 %v607_v6, %v568_v2  ;;  %v2244_v2 = vld [vmem:[#allocation2 + $0x108] sm:$0xff] }
 0x3dd   :  { %834 = vmatpush.bf16.msrb.mxu2 %v2244_v2 }
 0x3e1   :  { %v569_v3 = vpop.f32.mrf.mxu0 }
 0x3e2   :  { %v570_v8 = vadd.f32 %v2540_v1, %v569_v3  ;;  %v617_v3 = vadd.f32 %v2511_v63, %v2511_v63 }
 0x3e4   :  { %v624_v12 = vadd.f32 %v608_v7, %v570_v8  ;;  %v2243_v8 = vld [vmem:[#allocation2 + $0x100] sm:$0xff] }
 0x3e5   :  { %835 = vmatpush.bf16.msrb.mxu2 %v2243_v8 }
 0x3e6   :  { %v639_v13 = vpack.c.bf16 %v624_v12, %v623_v11  ;;  %v2242_v12 = vld [vmem:[#allocation2 + $0xf8] sm:$0xff] }
 0x3e8   :  { %721 = vmatmul.bf16.vlgmr.msrb.gmra.mxu1 %v639_v13 }
 0x3e9   :  { %v572_v14 = vpop.f32.mrf.mxu0  ;;  %836 = vmatpush.bf16.msrb.mxu2 %v2242_v12 }
 0x3ea   :  { %v573_v15 = vadd.f32 %v2540_v1, %v572_v14  ;;  %v2241_v14 = vld [vmem:[#allocation2 + $0xf0] sm:$0xff] }
 0x3ec   :  { %v625_v25 = vadd.f32 %v609_v17, %v573_v15  ;;  %v2240_v15 = vld [vmem:[#allocation2 + $0xe8] sm:$0xff]  ;;  %v620_v17 = vadd.f32 %v2519_v5, %v2519_v5  ;;  %v621_v5 = vadd.f32 %v2523_v9, %v2523_v9 }
 0x3ed   :  { %837 = vmatpush.bf16.msrb.mxu2 %v2241_v14 }
 0x3f1   :  { %v574_v16 = vpop.f32.mrf.mxu0  ;;  %838 = vmatpush.bf16.msrb.mxu2 %v2240_v15 }
 0x3f2   :  { %v575_v38 = vadd.f32 %v2540_v1, %v574_v16 }
 0x3f4   :  { %v626_v39 = vadd.f32 %v610_v18, %v575_v38 }
 0x3f6   :  { %v640_v26 = vpack.c.bf16 %v626_v39, %v625_v25  ;;  %v2239_v39 = vld [vmem:[#allocation2 + $0xe0] sm:$0xff] }
 0x3f7   :  { %839 = vmatpush.bf16.msrb.mxu2 %v2239_v39 }
 0x3f8   :  { %726 = vmatmul.bf16.gmra.mxu1 %v640_v26 }
 0x3f9   :  { %v577_v27 = vpop.f32.mrf.mxu0 }
 0x3fa   :  { %v578_v28 = vadd.f32 %v2540_v1, %v577_v27  ;;  %v2238_v27 = vld [vmem:[#allocation2 + $0xd8] sm:$0xff] }
 0x3fb   :  { %840 = vmatpush.bf16.msrb.mxu2 %v2238_v27 }
 0x3fc   :  { %v627_v33 = vadd.f32 %v611_v31, %v578_v28 }
 0x401   :  { %v579_v30 = vpop.f32.mrf.mxu0 }
 0x402   :  { %v580_v43 = vadd.f32 %v2540_v1, %v579_v30  ;;  %v2237_v30 = vld [vmem:[#allocation2 + $0xd0] sm:$0xff] }
 0x403   :  { %841 = vmatpush.bf16.msrb.mxu2 %v2237_v30 }
 0x404   :  { %v628_v44 = vadd.f32 %v612_v32, %v580_v43  ;;  %v622_v32 = vadd.f32 %v2525_v10, %v2525_v10 }
 0x406   :  { %v641_v35 = vpack.c.bf16 %v628_v44, %v627_v33 }
 0x408   :  { %731 = vmatmul.bf16.gmra.mxu1 %v641_v35 }
 0x409   :  { %v582_v36 = vpop.f32.mrf.mxu0 }
 0x40a   :  { %v583_v37 = vadd.f32 %v2540_v1, %v582_v36 }
 0x40c   :  { %v629_v45 = vadd.f32 %v613_v41, %v583_v37  ;;  %v2294_v37 = vld [vmem:[%s2885_s3 + $0x3] ss:$0 sm:$0xff] }
 0x411   :  { %v584_v40 = vpop.f32.mrf.mxu0 }
 0x412   :  { %v585_v48 = vadd.f32 %v2540_v1, %v584_v40 }
 0x414   :  { %v630_v49 = vadd.f32 %v614_v42, %v585_v48 }
 0x416   :  { %v642_v46 = vpack.c.bf16 %v630_v49, %v629_v45 }
 0x418   :  { %736 = vmatmul.bf16.gmra.mxu1 %v642_v46 }
 0x419   :  { %v587_v47 = vpop.f32.mrf.mxu0 }
 0x41a   :  { %v588_v50 = vadd.f32 %v2540_v1, %v587_v47 }
 0x41c   :  { %v631_v56 = vadd.f32 %v615_v52, %v588_v50 }
 0x421   :  { %v589_v51 = vpop.f32.mrf.mxu0 }
 0x422   :  { %v590_v53 = vadd.f32 %v2540_v1, %v589_v51 }
 0x424   :  { %v632_v54 = vadd.f32 %v616_v55, %v590_v53 }
 0x426   :  { %v643_v57 = vpack.c.bf16 %v632_v54, %v631_v56 }
 0x428   :  { %741 = vmatmul.bf16.gmra.mxu1 %v643_v57 }
 0x429   :  { %v592_v60 = vpop.f32.mrf.mxu0 }
 0x42a   :  { %v593_v61 = vadd.f32 %v2540_v1, %v592_v60 }
 0x42c   :  { %v633_v59 = vadd.f32 %v617_v3, %v593_v61 }
 0x431   :  { %v594_v62 = vpop.f32.mrf.mxu0 }
 0x432   :  { %v595_v6 = vadd.f32 %v2540_v1, %v594_v62 }
 0x434   :  { %v634_v7 = vadd.f32 %v618_v58, %v595_v6 }
 0x436   :  { %v644_v11 = vpack.c.bf16 %v634_v7, %v633_v59 }
 0x438   :  { %746 = vmatmul.bf16.gmra.mxu1 %v644_v11 }
 0x439   :  { %v597_v13 = vpop.f32.mrf.mxu0 }
 0x43a   :  { %v598_v63 = vadd.f32 %v2540_v1, %v597_v13 }
 0x43c   :  { %v635_v38 = vadd.f32 %v619_v0, %v598_v63 }
 0x441   :  { %v599_v16 = vpop.f32.mrf.mxu0 }
 0x442   :  { %v600_v18 = vadd.f32 %v2540_v1, %v599_v16 }
 0x444   :  { %v636_v25 = vadd.f32 %v620_v17, %v600_v18 }
 0x446   :  { %v645_v26 = vpack.c.bf16 %v636_v25, %v635_v38 }
 0x448   :  { %751 = vmatmul.bf16.gmra.mxu1 %v645_v26 }
 0x449   :  { %v602_v28 = vpop.f32.mrf.mxu0 }
 0x44a   :  { %v603_v31 = vadd.f32 %v2540_v1, %v602_v28 }
 0x44c   :  { %v637_v33 = vadd.f32 %v621_v5, %v603_v31 }
 0x451   :  { %v604_v4 = vpop.f32.mrf.mxu0 }
 0x452   :  { %v605_v43 = vadd.f32 %v2540_v1, %v604_v4 }
 0x454   :  { %v638_v44 = vadd.f32 %v622_v32, %v605_v43 }
 0x456   :  { %v646_v35 = vpack.c.bf16 %v638_v44, %v637_v33 }
 0x458   :  { %756 = vmatmul.bf16.gmra.mxu1 %v646_v35 }
 0x465   :  { %v722_v36 = vpop.f32.mrf.mxu1 }
 0x466   :  { %v723_v41 = vadd.f32 %v2294_v37, %v722_v36 }
 0x46d   :  { %v724_v40 = vpop.f32.mrf.mxu1 }
 0x46e   :  { %v725_v42 = vadd.f32 %v2294_v37, %v724_v40 }
 0x470   :  { %v762_v48 = vpack.c.bf16 %v725_v42, %v723_v41 }
 0x472   :  { %842 = vmatmul.bf16.vlgmr.msrb.gmra.mxu2 %v762_v48 }
 0x475   :  { %v727_v9 = vpop.f32.mrf.mxu1 }
 0x476   :  { %v728_v49 = vadd.f32 %v2294_v37, %v727_v9 }
 0x47d   :  { %v729_v45 = vpop.f32.mrf.mxu1 }
 0x47e   :  { %v730_v10 = vadd.f32 %v2294_v37, %v729_v45 }
 0x480   :  { %v763_v46 = vpack.c.bf16 %v730_v10, %v728_v49  ;;  %v2252_v10 = vld [vmem:[#allocation2 + $0x148] sm:$0xff] }
 0x481   :  { %1014 = vmatpush.bf16.msra.mxu0 %v2252_v10 }
 0x482   :  { %847 = vmatmul.bf16.gmra.mxu2 %v763_v46  ;;  %v2251_v46 = vld [vmem:[#allocation2 + $0x140] sm:$0xff] }
 0x485   :  { %v732_v1 = vpop.f32.mrf.mxu1  ;;  %1015 = vmatpush.bf16.msra.mxu0 %v2251_v46 }
 0x486   :  { %v733_v50 = vadd.f32 %v2294_v37, %v732_v1  ;;  %v2250_v1 = vld [vmem:[#allocation2 + $0x138] sm:$0xff] }
 0x489   :  { %1016 = vmatpush.bf16.msra.mxu0 %v2250_v1 }
 0x48d   :  { %v734_v47 = vpop.f32.mrf.mxu1 }
 0x48e   :  { %v735_v51 = vadd.f32 %v2294_v37, %v734_v47  ;;  %v2249_v47 = vld [vmem:[#allocation2 + $0x130] sm:$0xff] }
 0x48f   :  { %1017 = vmatpush.bf16.msra.mxu0 %v2249_v47 }
 0x490   :  { %v764_v52 = vpack.c.bf16 %v735_v51, %v733_v50  ;;  %v2248_v50 = vld [vmem:[#allocation2 + $0x128] sm:$0xff]  ;;  %v2247_v51 = vld [vmem:[#allocation2 + $0x120] sm:$0xff] }
 0x492   :  { %852 = vmatmul.bf16.gmra.mxu2 %v764_v52  ;;  %v2246_v52 = vld [vmem:[#allocation2 + $0x118] sm:$0xff] }
 0x493   :  { %1018 = vmatpush.bf16.msra.mxu0 %v2248_v50 }
 0x495   :  { %v737_v55 = vpop.f32.mrf.mxu1 }
 0x496   :  { %v738_v56 = vadd.f32 %v2294_v37, %v737_v55  ;;  %v2245_v55 = vld [vmem:[#allocation2 + $0x110] sm:$0xff] }
 0x497   :  { %1019 = vmatpush.bf16.msra.mxu0 %v2247_v51 }
 0x49b   :  { %1020 = vmatpush.bf16.msra.mxu0 %v2246_v52 }
 0x49d   :  { %v739_v53 = vpop.f32.mrf.mxu1 }
 0x49e   :  { %v740_v54 = vadd.f32 %v2294_v37, %v739_v53 }
 0x49f   :  { %1021 = vmatpush.bf16.msra.mxu0 %v2245_v55 }
 0x4a0   :  { %v765_v57 = vpack.c.bf16 %v740_v54, %v738_v56  ;;  %v2295_v56 = vld [vmem:[%s2885_s3 + $0x4] ss:$0 sm:$0xff] }
 0x4a2   :  { %857 = vmatmul.bf16.gmra.mxu2 %v765_v57 }
 0x4a5   :  { %v742_v60 = vpop.f32.mrf.mxu1 }
 0x4a6   :  { %v743_v62 = vadd.f32 %v2294_v37, %v742_v60 }
 0x4ad   :  { %v744_v61 = vpop.f32.mrf.mxu1 }
 0x4ae   :  { %v745_v2 = vadd.f32 %v2294_v37, %v744_v61 }
 0x4b0   :  { %v766_v3 = vpack.c.bf16 %v745_v2, %v743_v62 }
 0x4b2   :  { %862 = vmatmul.bf16.gmra.mxu2 %v766_v3 }
 0x4b5   :  { %v747_v58 = vpop.f32.mrf.mxu1 }
 0x4b6   :  { %v748_v59 = vadd.f32 %v2294_v37, %v747_v58 }
 0x4bd   :  { %v749_v6 = vpop.f32.mrf.mxu1 }
 0x4be   :  { %v750_v7 = vadd.f32 %v2294_v37, %v749_v6 }
 0x4c0   :  { %v767_v8 = vpack.c.bf16 %v750_v7, %v748_v59 }
 0x4c2   :  { %867 = vmatmul.bf16.gmra.mxu2 %v767_v8 }
 0x4c5   :  { %v752_v11 = vpop.f32.mrf.mxu1 }
 0x4c6   :  { %v753_v13 = vadd.f32 %v2294_v37, %v752_v11 }
 0x4cd   :  { %v754_v12 = vpop.f32.mrf.mxu1 }
 0x4ce   :  { %v755_v14 = vadd.f32 %v2294_v37, %v754_v12 }
 0x4d0   :  { %v768_v15 = vpack.c.bf16 %v755_v14, %v753_v13 }
 0x4d2   :  { %872 = vmatmul.bf16.gmra.mxu2 %v768_v15 }
 0x4d5   :  { %v757_v63 = vpop.f32.mrf.mxu1 }
 0x4d6   :  { %v758_v0 = vadd.f32 %v2294_v37, %v757_v63 }
 0x4dd   :  { %v759_v16 = vpop.f32.mrf.mxu1 }
 0x4de   :  { %v760_v17 = vadd.f32 %v2294_v37, %v759_v16 }
 0x4e0   :  { %v769_v18 = vpack.c.bf16 %v760_v17, %v758_v0 }
 0x4e2   :  { %877 = vmatmul.bf16.gmra.mxu2 %v769_v18 }
 0x4f5   :  { %v843_v38 = vpop.f32.mrf.mxu2 }
 0x4fd   :  { %v845_v25 = vpop.f32.mrf.mxu2 }
 0x4fe   :  { %v883_v49 = vpack.c.bf16 %v845_v25, %v843_v38 }
 0x505   :  { %v848_v39 = vpop.f32.mrf.mxu2 }
 0x50d   :  { %v850_v26 = vpop.f32.mrf.mxu2 }
 0x50e   :  { %v884_v45 = vpack.c.bf16 %v850_v26, %v848_v39 }
 0x515   :  { %v853_v27 = vpop.f32.mrf.mxu2 }
 0x51d   :  { %v855_v28 = vpop.f32.mrf.mxu2 }
 0x51e   :  { %v885_v9 = vpack.c.bf16 %v855_v28, %v853_v27 }
 0x525   :  { %v858_v30 = vpop.f32.mrf.mxu2 }
 0x52d   :  { %v860_v31 = vpop.f32.mrf.mxu2 }
 0x52e   :  { %v886_v48 = vpack.c.bf16 %v860_v31, %v858_v30 }
 0x535   :  { %v863_v4 = vpop.f32.mrf.mxu2 }
 0x53d   :  { %v865_v5 = vpop.f32.mrf.mxu2 }
 0x53e   :  { %v887_v42 = vpack.c.bf16 %v865_v5, %v863_v4 }
 0x545   :  { %v868_v32 = vpop.f32.mrf.mxu2 }
 0x54d   :  { %v870_v43 = vpop.f32.mrf.mxu2 }
 0x54e   :  { %v888_v41 = vpack.c.bf16 %v870_v43, %v868_v32 }
 0x555   :  { %v873_v33 = vpop.f32.mrf.mxu2 }
 0x55d   :  { %v875_v44 = vpop.f32.mrf.mxu2 }
 0x55e   :  { %v889_v37 = vpack.c.bf16 %v875_v44, %v873_v33 }
 0x565   :  { %v878_v35 = vpop.f32.mrf.mxu2 }
 0x56d   :  { %v880_v36 = vpop.f32.mrf.mxu2 }
 0x56e   :  { %v890_v40 = vpack.c.bf16 %v880_v36, %v878_v35 }
 0x570   :  { %893 = vmatpush.bf16.msrb.mxu3 %v890_v40 }
 0x574   :  { %894 = vmatpush.bf16.msrb.mxu3 %v889_v37 }
 0x578   :  { %895 = vmatpush.bf16.msrb.mxu3 %v888_v41 }
 0x57c   :  { %896 = vmatpush.bf16.msrb.mxu3 %v887_v42 }
 0x580   :  { %897 = vmatpush.bf16.msrb.mxu3 %v886_v48 }
 0x584   :  { %898 = vmatpush.bf16.msrb.mxu3 %v885_v9 }
 0x588   :  { %899 = vmatpush.bf16.msrb.mxu3 %v884_v45 }
 0x58c   :  { %900 = vmatpush.bf16.msrb.mxu3 %v883_v49 }
 0x58f   :  { %901 = vmatmul.bf16.vlgmr.msrb.gmra.mxu3 %v2433_v19 }
 0x59f   :  { %906 = vmatmul.bf16.gmra.mxu3 %v2439_v20 }
 0x5af   :  { %911 = vmatmul.bf16.gmra.mxu3 %v2445_v21 }
 0x5bf   :  { %916 = vmatmul.bf16.gmra.mxu3 %v2451_v22 }
 0x5cf   :  { %921 = vmatmul.bf16.gmra.mxu3 %v2457_v23 }
 0x5df   :  { %926 = vmatmul.bf16.gmra.mxu3 %v2463_v24 }
 0x5ef   :  { %931 = vmatmul.bf16.gmra.mxu3 %v2469_v29 }
 0x5ff   :  { %936 = vmatmul.bf16.gmra.mxu3 %v2475_v34 }
 0x612   :  { %v902_v53 = vpop.f32.mrf.mxu3 }
 0x613   :  { %v2604_v57 = vadd.f32 %v2295_v56, %v902_v53 }
 0x61a   :  { %v904_v54 = vpop.f32.mrf.mxu3 }
 0x61b   :  { %v2606_v60 = vadd.f32 %v2295_v56, %v904_v54 }
 0x61d   :  { %v942_v61 = vpack.c.bf16 %v2606_v60, %v2604_v57 }
 0x61f   :  { %1022 = vmatmul.bf16.vlgmr.msra.gmra.mxu0 %v942_v61 }
 0x622   :  { %v907_v62 = vpop.f32.mrf.mxu3 }
 0x623   :  { %v2610_v3 = vadd.f32 %v2295_v56, %v907_v62 }
 0x62a   :  { %v909_v2 = vpop.f32.mrf.mxu3 }
 0x62b   :  { %v2612_v58 = vadd.f32 %v2295_v56, %v909_v2 }
 0x62d   :  { %v943_v6 = vpack.c.bf16 %v2612_v58, %v2610_v3 }
 0x62f   :  { %1027 = vmatmul.bf16.gmra.mxu0 %v943_v6 }
 0x632   :  { %v912_v59 = vpop.f32.mrf.mxu3 }
 0x633   :  { %v2616_v8 = vadd.f32 %v2295_v56, %v912_v59 }
 0x63a   :  { %v914_v7 = vpop.f32.mrf.mxu3 }
 0x63b   :  { %v2618_v11 = vadd.f32 %v2295_v56, %v914_v7 }
 0x63d   :  { %v944_v12 = vpack.c.bf16 %v2618_v11, %v2616_v8 }
 0x63f   :  { %1032 = vmatmul.bf16.gmra.mxu0 %v944_v12  ;;  %v2260_v12 = vld [vmem:[#allocation2 + $0x188] sm:$0xff] }
 0x640   :  { %1228 = vmatpush.bf16.msra.mxu2 %v2260_v12 }
 0x642   :  { %v917_v13 = vpop.f32.mrf.mxu3 }
 0x643   :  { %v2622_v15 = vadd.f32 %v2295_v56, %v917_v13  ;;  %v2259_v13 = vld [vmem:[#allocation2 + $0x180] sm:$0xff] }
 0x644   :  { %1229 = vmatpush.bf16.msra.mxu2 %v2259_v13 }
 0x64a   :  { %v919_v14 = vpop.f32.mrf.mxu3 }
 0x64b   :  { %v2624_v63 = vadd.f32 %v2295_v56, %v919_v14  ;;  %v2258_v14 = vld [vmem:[#allocation2 + $0x178] sm:$0xff] }
 0x64c   :  { %1230 = vmatpush.bf16.msra.mxu2 %v2258_v14 }
 0x64d   :  { %v945_v16 = vpack.c.bf16 %v2624_v63, %v2622_v15 }
 0x64f   :  { %1037 = vmatmul.bf16.gmra.mxu0 %v945_v16  ;;  %v2257_v16 = vld [vmem:[#allocation2 + $0x170] sm:$0xff] }
 0x650   :  { %1231 = vmatpush.bf16.msra.mxu2 %v2257_v16 }
 0x652   :  { %v922_v0 = vpop.f32.mrf.mxu3 }
 0x653   :  { %v2628_v18 = vadd.f32 %v2295_v56, %v922_v0  ;;  %v2256_v0 = vld [vmem:[#allocation2 + $0x168] sm:$0xff] }
 0x654   :  { %1232 = vmatpush.bf16.msra.mxu2 %v2256_v0 }
 0x65a   :  { %v924_v17 = vpop.f32.mrf.mxu3 }
 0x65b   :  { %v2630_v38 = vadd.f32 %v2295_v56, %v924_v17 }
 0x65d   :  { %v946_v25 = vpack.c.bf16 %v2630_v38, %v2628_v18 }
 0x65f   :  { %1042 = vmatmul.bf16.gmra.mxu0 %v946_v25  ;;  %v1122_v25 = vadd.f32 %v2604_v57, %v2604_v57 }
 0x662   :  { %v927_v39 = vpop.f32.mrf.mxu3 }
 0x663   :  { %v2634_v27 = vadd.f32 %v2295_v56, %v927_v39 }
 0x665   :  { %v1132_v13 = vadd.f32 %v2634_v27, %v2634_v27 }
 0x66a   :  { %v929_v26 = vpop.f32.mrf.mxu3 }
 0x66b   :  { %v2636_v28 = vadd.f32 %v2295_v56, %v929_v26 }
 0x66d   :  { %v947_v30 = vpack.c.bf16 %v2636_v28, %v2634_v27  ;;  %v1133_v14 = vadd.f32 %v2636_v28, %v2636_v28  ;;  %v2265_v27 = vld [vmem:[#allocation2 + $0x1b0] sm:$0xff] }
 0x66f   :  { %1047 = vmatmul.bf16.gmra.mxu0 %v947_v30 }
 0x672   :  { %v932_v31 = vpop.f32.mrf.mxu3 }
 0x673   :  { %v2640_v5 = vadd.f32 %v2295_v56, %v932_v31 }
 0x675   :  { %v1134_v28 = vadd.f32 %v2640_v5, %v2640_v5 }
 0x67a   :  { %v934_v4 = vpop.f32.mrf.mxu3 }
 0x67b   :  { %v2642_v32 = vadd.f32 %v2295_v56, %v934_v4 }
 0x67d   :  { %v948_v43 = vpack.c.bf16 %v2642_v32, %v2640_v5 }
 0x67f   :  { %1052 = vmatmul.bf16.gmra.mxu0 %v948_v43 }
 0x682   :  { %v937_v33 = vpop.f32.mrf.mxu3 }
 0x683   :  { %v2646_v35 = vadd.f32 %v2295_v56, %v937_v33  ;;  %v1124_v33 = vadd.f32 %v2610_v3, %v2610_v3 }
 0x685   :  { %v1136_v5 = vadd.f32 %v2646_v35, %v2646_v35 }
 0x68a   :  { %v939_v44 = vpop.f32.mrf.mxu3 }
 0x68b   :  { %v2648_v36 = vadd.f32 %v2295_v56, %v939_v44  ;;  %v1125_v44 = vadd.f32 %v2612_v58, %v2612_v58 }
 0x68d   :  { %v949_v40 = vpack.c.bf16 %v2648_v36, %v2646_v35 }
 0x68f   :  { %1057 = vmatmul.bf16.gmra.mxu0 %v949_v40 }
 0x69c   :  { %v1023_v37 = vpop.f32.mrf.mxu0 }
 0x6a4   :  { %v1025_v41 = vpop.f32.mrf.mxu0 }
 0x6a5   :  { %v1063_v7 = vpack.c.bf16 %v1025_v41, %v1023_v37 }
 0x6ac   :  { %v1028_v42 = vpop.f32.mrf.mxu0 }
 0x6b4   :  { %v1030_v48 = vpop.f32.mrf.mxu0 }
 0x6b5   :  { %v1064_v59 = vpack.c.bf16 %v1030_v48, %v1028_v42 }
 0x6bc   :  { %v1033_v9 = vpop.f32.mrf.mxu0 }
 0x6c4   :  { %v1035_v45 = vpop.f32.mrf.mxu0 }
 0x6c5   :  { %v1065_v6 = vpack.c.bf16 %v1035_v45, %v1033_v9  ;;  %v1126_v9 = vadd.f32 %v2616_v8, %v2616_v8  ;;  %v1127_v45 = vadd.f32 %v2618_v11, %v2618_v11 }
 0x6cc   :  { %v1038_v49 = vpop.f32.mrf.mxu0 }
 0x6d4   :  { %v1040_v10 = vpop.f32.mrf.mxu0 }
 0x6d5   :  { %v1066_v2 = vpack.c.bf16 %v1040_v10, %v1038_v49 }
 0x6dc   :  { %v1043_v46 = vpop.f32.mrf.mxu0 }
 0x6e4   :  { %v1045_v1 = vpop.f32.mrf.mxu0 }
 0x6e5   :  { %v1067_v62 = vpack.c.bf16 %v1045_v1, %v1043_v46 }
 0x6ec   :  { %v1048_v47 = vpop.f32.mrf.mxu0 }
 0x6f4   :  { %v1050_v50 = vpop.f32.mrf.mxu0 }
 0x6f5   :  { %v1068_v61 = vpack.c.bf16 %v1050_v50, %v1048_v47  ;;  %v1128_v50 = vadd.f32 %v2622_v15, %v2622_v15 }
 0x6fc   :  { %v1053_v51 = vpop.f32.mrf.mxu0 }
 0x704   :  { %v1055_v52 = vpop.f32.mrf.mxu0 }
 0x705   :  { %v1069_v54 = vpack.c.bf16 %v1055_v52, %v1053_v51  ;;  %v1129_v51 = vadd.f32 %v2624_v63, %v2624_v63 }
 0x70c   :  { %v1058_v55 = vpop.f32.mrf.mxu0 }
 0x714   :  { %v1060_v53 = vpop.f32.mrf.mxu0 }
 0x715   :  { %v1070_v56 = vpack.c.bf16 %v1060_v53, %v1058_v55 }
 0x717   :  { %1073 = vmatpush.bf16.msra.mxu1 %v1070_v56 }
 0x71b   :  { %1074 = vmatpush.bf16.msra.mxu1 %v1069_v54 }
 0x71f   :  { %1075 = vmatpush.bf16.msra.mxu1 %v1068_v61  ;;  %v1130_v61 = vadd.f32 %v2628_v18, %v2628_v18 }
 0x723   :  { %1076 = vmatpush.bf16.msra.mxu1 %v1067_v62  ;;  %v1131_v62 = vadd.f32 %v2630_v38, %v2630_v38 }
 0x727   :  { %1077 = vmatpush.bf16.msra.mxu1 %v1066_v2 }
 0x72b   :  { %1078 = vmatpush.bf16.msra.mxu1 %v1065_v6 }
 0x72f   :  { %1079 = vmatpush.bf16.msra.mxu1 %v1064_v59 }
 0x733   :  { %1080 = vmatpush.bf16.msra.mxu1 %v1063_v7 }
 0x736   :  { %1081 = vmatmul.bf16.vlgmr.msra.gmra.mxu1 %v2433_v19  ;;  %v2255_v19 = vld [vmem:[#allocation2 + $0x160] sm:$0xff] }
 0x737   :  { %1233 = vmatpush.bf16.msra.mxu2 %v2255_v19  ;;  %v2268_v19 = vld [vmem:[#allocation2 + $0x1c8] sm:$0xff] }
 0x738   :  { %1349 = vmatpush.bf16.msra.mxu3 %v2268_v19 }
 0x746   :  { %1086 = vmatmul.bf16.gmra.mxu1 %v2439_v20  ;;  %v2254_v20 = vld [vmem:[#allocation2 + $0x158] sm:$0xff] }
 0x747   :  { %1234 = vmatpush.bf16.msra.mxu2 %v2254_v20 }
 0x756   :  { %1091 = vmatmul.bf16.gmra.mxu1 %v2445_v21  ;;  %v2253_v21 = vld [vmem:[#allocation2 + $0x150] sm:$0xff] }
 0x757   :  { %1235 = vmatpush.bf16.msra.mxu2 %v2253_v21  ;;  %v2267_v21 = vld [vmem:[#allocation2 + $0x1c0] sm:$0xff] }
 0x758   :  { %1350 = vmatpush.bf16.msra.mxu3 %v2267_v21 }
 0x766   :  { %1096 = vmatmul.bf16.gmra.mxu1 %v2451_v22 }
 0x776   :  { %1101 = vmatmul.bf16.gmra.mxu1 %v2457_v23  ;;  %v2663_v23 = vld [vmem:[%s2885_s3 + $0x5] ss:$0 sm:$0xff] }
 0x786   :  { %1106 = vmatmul.bf16.gmra.mxu1 %v2463_v24 }
 0x796   :  { %1111 = vmatmul.bf16.gmra.mxu1 %v2469_v29  ;;  %v1123_v29 = vadd.f32 %v2606_v60, %v2606_v60 }
 0x7a6   :  { %1116 = vmatmul.bf16.gmra.mxu1 %v2475_v34 }
 0x7b3   :  { %v1082_v22 = vpop.f32.mrf.mxu1 }
 0x7b4   :  { %v1083_v24 = vadd.f32 %v2663_v23, %v1082_v22  ;;  %v2266_v22 = vld [vmem:[#allocation2 + $0x1b8] sm:$0xff] }
 0x7b5   :  { %1351 = vmatpush.bf16.msra.mxu3 %v2266_v22 }
 0x7b6   :  { %v1138_v26 = vadd.f32 %v1122_v25, %v1083_v24  ;;  %v1135_v25 = vadd.f32 %v2642_v32, %v2642_v32  ;;  %v1137_v32 = vadd.f32 %v2648_v36, %v2648_v36 }
 0x7b9   :  { %1352 = vmatpush.bf16.msra.mxu3 %v2265_v27 }
 0x7bb   :  { %v1084_v17 = vpop.f32.mrf.mxu1 }
 0x7bc   :  { %v1085_v39 = vadd.f32 %v2663_v23, %v1084_v17 }
 0x7be   :  { %v1139_v30 = vadd.f32 %v1123_v29, %v1085_v39 }
 0x7c0   :  { %v1154_v34 = vpack.c.bf16 %v1139_v30, %v1138_v26  ;;  %v2264_v30 = vld [vmem:[#allocation2 + $0x1a8] sm:$0xff] }
 0x7c1   :  { %1353 = vmatpush.bf16.msra.mxu3 %v2264_v30 }
 0x7c2   :  { %1236 = vmatmul.bf16.vlgmr.msra.gmra.mxu2 %v1154_v34 }
 0x7c3   :  { %v1087_v31 = vpop.f32.mrf.mxu1 }
 0x7c4   :  { %v1088_v4 = vadd.f32 %v2663_v23, %v1087_v31 }
 0x7c6   :  { %v1140_v40 = vadd.f32 %v1124_v33, %v1088_v4  ;;  %v2263_v4 = vld [vmem:[#allocation2 + $0x1a0] sm:$0xff] }
 0x7c7   :  { %1354 = vmatpush.bf16.msra.mxu3 %v2263_v4 }
 0x7cb   :  { %v1089_v43 = vpop.f32.mrf.mxu1 }
 0x7cc   :  { %v1090_v57 = vadd.f32 %v2663_v23, %v1089_v43  ;;  %v2262_v43 = vld [vmem:[#allocation2 + $0x198] sm:$0xff] }
 0x7cd   :  { %1355 = vmatpush.bf16.msra.mxu3 %v2262_v43 }
 0x7ce   :  { %v1141_v60 = vadd.f32 %v1125_v44, %v1090_v57 }
 0x7d0   :  { %v1155_v37 = vpack.c.bf16 %v1141_v60, %v1140_v40  ;;  %v2261_v40 = vld [vmem:[#allocation2 + $0x190] sm:$0xff] }
 0x7d1   :  { %1356 = vmatpush.bf16.msra.mxu3 %v2261_v40 }
 0x7d2   :  { %1241 = vmatmul.bf16.gmra.mxu2 %v1155_v37 }
 0x7d3   :  { %v1092_v41 = vpop.f32.mrf.mxu1 }
 0x7d4   :  { %v1093_v42 = vadd.f32 %v2663_v23, %v1092_v41 }
 0x7d6   :  { %v1142_v49 = vadd.f32 %v1126_v9, %v1093_v42 }
 0x7db   :  { %v1094_v48 = vpop.f32.mrf.mxu1 }
 0x7dc   :  { %v1095_v3 = vadd.f32 %v2663_v23, %v1094_v48  ;;  %v2297_v48 = vld [vmem:[%s2885_s3 + $0x6] ss:$0 sm:$0xff] }
 0x7de   :  { %v1143_v58 = vadd.f32 %v1127_v45, %v1095_v3 }
 0x7e0   :  { %v1156_v10 = vpack.c.bf16 %v1143_v58, %v1142_v49 }
 0x7e2   :  { %1246 = vmatmul.bf16.gmra.mxu2 %v1156_v10 }
 0x7e3   :  { %v1097_v46 = vpop.f32.mrf.mxu1 }
 0x7e4   :  { %v1098_v1 = vadd.f32 %v2663_v23, %v1097_v46 }
 0x7e6   :  { %v1144_v52 = vadd.f32 %v1128_v50, %v1098_v1 }
 0x7eb   :  { %v1099_v47 = vpop.f32.mrf.mxu1 }
 0x7ec   :  { %v1100_v8 = vadd.f32 %v2663_v23, %v1099_v47 }
 0x7ee   :  { %v1145_v11 = vadd.f32 %v1129_v51, %v1100_v8 }
 0x7f0   :  { %v1157_v55 = vpack.c.bf16 %v1145_v11, %v1144_v52 }
 0x7f2   :  { %1251 = vmatmul.bf16.gmra.mxu2 %v1157_v55 }
 0x7f3   :  { %v1102_v53 = vpop.f32.mrf.mxu1 }
 0x7f4   :  { %v1103_v56 = vadd.f32 %v2663_v23, %v1102_v53 }
 0x7f6   :  { %v1146_v2 = vadd.f32 %v1130_v61, %v1103_v56 }
 0x7fb   :  { %v1104_v54 = vpop.f32.mrf.mxu1 }
 0x7fc   :  { %v1105_v15 = vadd.f32 %v2663_v23, %v1104_v54 }
 0x7fe   :  { %v1147_v63 = vadd.f32 %v1131_v62, %v1105_v15 }
 0x800   :  { %v1158_v6 = vpack.c.bf16 %v1147_v63, %v1146_v2 }
 0x802   :  { %1256 = vmatmul.bf16.gmra.mxu2 %v1158_v6 }
 0x803   :  { %v1107_v59 = vpop.f32.mrf.mxu1 }
 0x804   :  { %v1108_v7 = vadd.f32 %v2663_v23, %v1107_v59 }
 0x806   :  { %v1148_v16 = vadd.f32 %v1132_v13, %v1108_v7 }
 0x80b   :  { %v1109_v12 = vpop.f32.mrf.mxu1 }
 0x80c   :  { %v1110_v18 = vadd.f32 %v2663_v23, %v1109_v12 }
 0x80e   :  { %v1149_v38 = vadd.f32 %v1133_v14, %v1110_v18 }
 0x810   :  { %v1159_v0 = vpack.c.bf16 %v1149_v38, %v1148_v16 }
 0x812   :  { %1261 = vmatmul.bf16.gmra.mxu2 %v1159_v0 }
 0x813   :  { %v1112_v20 = vpop.f32.mrf.mxu1 }
 0x814   :  { %v1113_v24 = vadd.f32 %v2663_v23, %v1112_v20 }
 0x816   :  { %v1150_v39 = vadd.f32 %v1134_v28, %v1113_v24 }
 0x81b   :  { %v1114_v17 = vpop.f32.mrf.mxu1 }
 0x81c   :  { %v1115_v29 = vadd.f32 %v2663_v23, %v1114_v17 }
 0x81e   :  { %v1151_v26 = vadd.f32 %v1135_v25, %v1115_v29 }
 0x820   :  { %v1160_v34 = vpack.c.bf16 %v1151_v26, %v1150_v39 }
 0x822   :  { %1266 = vmatmul.bf16.gmra.mxu2 %v1160_v34 }
 0x823   :  { %v1117_v31 = vpop.f32.mrf.mxu1 }
 0x824   :  { %v1118_v33 = vadd.f32 %v2663_v23, %v1117_v31 }
 0x826   :  { %v1152_v60 = vadd.f32 %v1136_v5, %v1118_v33 }
 0x82b   :  { %v1119_v44 = vpop.f32.mrf.mxu1 }
 0x82c   :  { %v1120_v57 = vadd.f32 %v2663_v23, %v1119_v44 }
 0x82e   :  { %v1153_v37 = vadd.f32 %v1137_v32, %v1120_v57 }
 0x830   :  { %v1161_v41 = vpack.c.bf16 %v1153_v37, %v1152_v60 }
 0x832   :  { %1271 = vmatmul.bf16.gmra.mxu2 %v1161_v41 }
 0x845   :  { %v1237_v42 = vpop.f32.mrf.mxu2 }
 0x846   :  { %v1238_v45 = vadd.f32 %v2297_v48, %v1237_v42 }
 0x84d   :  { %v1239_v9 = vpop.f32.mrf.mxu2 }
 0x84e   :  { %v1240_v3 = vadd.f32 %v2297_v48, %v1239_v9  ;;  %v2725_v9 = vld [vmem:[%s2883_s1 + $0x8] sm:$0xff] }
 0x850   :  { %v1277_v35 = vpack.c.bf16 %v1240_v3, %v1238_v45  ;;  %v2731_v45 = vld [vmem:[%s2883_s1 + $0x10] sm:$0xff]  ;;  %v2737_v3 = vld [vmem:[%s2883_s1 + $0x18] sm:$0xff] }
 0x852   :  { %1357 = vmatmul.bf16.vlgmr.msra.gmra.mxu3 %v1277_v35  ;;  %v2743_v35 = vld [vmem:[%s2883_s1 + $0x20] sm:$0xff] }
 0x855   :  { %v1242_v49 = vpop.f32.mrf.mxu2 }
 0x856   :  { %v1243_v58 = vadd.f32 %v2297_v48, %v1242_v49  ;;  %v2276_v49 = vld [vmem:[#allocation2 + $0x208] sm:$0xff] }
 0x857   :  { %1529 = vmatpush.bf16.msrb.mxu1 %v2276_v49 }
 0x85d   :  { %v1244_v36 = vpop.f32.mrf.mxu2 }
 0x85e   :  { %v1245_v23 = vadd.f32 %v2297_v48, %v1244_v36  ;;  %v2275_v36 = vld [vmem:[#allocation2 + $0x200] sm:$0xff] }
 0x85f   :  { %1530 = vmatpush.bf16.msrb.mxu1 %v2275_v36 }
 0x860   :  { %v1278_v10 = vpack.c.bf16 %v1245_v23, %v1243_v58  ;;  %v2749_v58 = vld [vmem:[%s2883_s1 + $0x28] sm:$0xff]  ;;  %v2274_v23 = vld [vmem:[#allocation2 + $0x1f8] sm:$0xff] }
 0x862   :  { %1362 = vmatmul.bf16.gmra.mxu3 %v1278_v10  ;;  %v2273_v10 = vld [vmem:[#allocation2 + $0x1f0] sm:$0xff] }
 0x863   :  { %1531 = vmatpush.bf16.msrb.mxu1 %v2274_v23 }
 0x865   :  { %v1247_v46 = vpop.f32.mrf.mxu2 }
 0x866   :  { %v1248_v47 = vadd.f32 %v2297_v48, %v1247_v46  ;;  %v2272_v46 = vld [vmem:[#allocation2 + $0x1e8] sm:$0xff] }
 0x867   :  { %1532 = vmatpush.bf16.msrb.mxu1 %v2273_v10 }
 0x86b   :  { %1533 = vmatpush.bf16.msrb.mxu1 %v2272_v46 }
 0x86d   :  { %v1249_v1 = vpop.f32.mrf.mxu2 }
 0x86e   :  { %v1250_v50 = vadd.f32 %v2297_v48, %v1249_v1  ;;  %v2271_v1 = vld [vmem:[#allocation2 + $0x1e0] sm:$0xff] }
 0x86f   :  { %1534 = vmatpush.bf16.msrb.mxu1 %v2271_v1 }
 0x870   :  { %v1279_v51 = vpack.c.bf16 %v1250_v50, %v1248_v47  ;;  %v2755_v47 = vld [vmem:[%s2883_s1 + $0x30] sm:$0xff]  ;;  %v2270_v50 = vld [vmem:[#allocation2 + $0x1d8] sm:$0xff] }
 0x872   :  { %1367 = vmatmul.bf16.gmra.mxu3 %v1279_v51  ;;  %v2269_v51 = vld [vmem:[#allocation2 + $0x1d0] sm:$0xff] }
 0x873   :  { %1535 = vmatpush.bf16.msrb.mxu1 %v2270_v50 }
 0x875   :  { %v1252_v8 = vpop.f32.mrf.mxu2 }
 0x876   :  { %v1253_v11 = vadd.f32 %v2297_v48, %v1252_v8  ;;  %v2761_v8 = vld [vmem:[%s2883_s1 + $0x38] sm:$0xff] }
 0x877   :  { %1536 = vmatpush.bf16.msrb.mxu1 %v2269_v51 }
 0x87d   :  { %v1254_v52 = vpop.f32.mrf.mxu2 }
 0x87e   :  { %v1255_v55 = vadd.f32 %v2297_v48, %v1254_v52 }
 0x880   :  { %v1280_v53 = vpack.c.bf16 %v1255_v55, %v1253_v11  ;;  %v2298_v11 = vld [vmem:[%s2885_s3 + $0x7] ss:$0 sm:$0xff] }
 0x882   :  { %1372 = vmatmul.bf16.gmra.mxu3 %v1280_v53 }
 0x885   :  { %v1257_v56 = vpop.f32.mrf.mxu2 }
 0x886   :  { %v1258_v61 = vadd.f32 %v2297_v48, %v1257_v56 }
 0x88d   :  { %v1259_v54 = vpop.f32.mrf.mxu2 }
 0x88e   :  { %v1260_v62 = vadd.f32 %v2297_v48, %v1259_v54 }
 0x890   :  { %v1281_v15 = vpack.c.bf16 %v1260_v62, %v1258_v61 }
 0x892   :  { %1377 = vmatmul.bf16.gmra.mxu3 %v1281_v15 }
 0x895   :  { %v1262_v2 = vpop.f32.mrf.mxu2 }
 0x896   :  { %v1263_v6 = vadd.f32 %v2297_v48, %v1262_v2 }
 0x89d   :  { %v1264_v63 = vpop.f32.mrf.mxu2 }
 0x89e   :  { %v1265_v59 = vadd.f32 %v2297_v48, %v1264_v63 }
 0x8a0   :  { %v1282_v7 = vpack.c.bf16 %v1265_v59, %v1263_v6 }
 0x8a2   :  { %1382 = vmatmul.bf16.gmra.mxu3 %v1282_v7 }
 0x8a5   :  { %v1267_v12 = vpop.f32.mrf.mxu2 }
 0x8a6   :  { %v1268_v14 = vadd.f32 %v2297_v48, %v1267_v12 }
 0x8ad   :  { %v1269_v13 = vpop.f32.mrf.mxu2 }
 0x8ae   :  { %v1270_v18 = vadd.f32 %v2297_v48, %v1269_v13 }
 0x8b0   :  { %v1283_v16 = vpack.c.bf16 %v1270_v18, %v1268_v14 }
 0x8b2   :  { %1387 = vmatmul.bf16.gmra.mxu3 %v1283_v16 }
 0x8b5   :  { %v1272_v38 = vpop.f32.mrf.mxu2 }
 0x8b6   :  { %v1273_v19 = vadd.f32 %v2297_v48, %v1272_v38 }
 0x8bd   :  { %v1274_v0 = vpop.f32.mrf.mxu2 }
 0x8be   :  { %v1275_v20 = vadd.f32 %v2297_v48, %v1274_v0  ;;  %v2719_v48 = vld [vmem:[%s2883_s1] sm:$0xff] }
 0x8c0   :  { %v1284_v21 = vpack.c.bf16 %v1275_v20, %v1273_v19 }
 0x8c2   :  { %1392 = vmatmul.bf16.gmra.mxu3 %v1284_v21 }
 0x8d5   :  { %v1358_v22 = vpop.f32.mrf.mxu3 }
 0x8dd   :  { %v1360_v24 = vpop.f32.mrf.mxu3 }
 0x8de   :  { %v1398_v42 = vpack.c.bf16 %v1360_v24, %v1358_v22 }
 0x8e5   :  { %v1363_v17 = vpop.f32.mrf.mxu3 }
 0x8ed   :  { %v1365_v27 = vpop.f32.mrf.mxu3 }
 0x8ee   :  { %v1399_v41 = vpack.c.bf16 %v1365_v27, %v1363_v17 }
 0x8f5   :  { %v1368_v28 = vpop.f32.mrf.mxu3 }
 0x8fd   :  { %v1370_v25 = vpop.f32.mrf.mxu3 }
 0x8fe   :  { %v1400_v37 = vpack.c.bf16 %v1370_v25, %v1368_v28 }
 0x905   :  { %v1373_v29 = vpop.f32.mrf.mxu3 }
 0x90d   :  { %v1375_v39 = vpop.f32.mrf.mxu3 }
 0x90e   :  { %v1401_v60 = vpack.c.bf16 %v1375_v39, %v1373_v29 }
 0x915   :  { %v1378_v26 = vpop.f32.mrf.mxu3 }
 0x91d   :  { %v1380_v30 = vpop.f32.mrf.mxu3 }
 0x91e   :  { %v1402_v40 = vpack.c.bf16 %v1380_v30, %v1378_v26 }
 0x925   :  { %v1383_v34 = vpop.f32.mrf.mxu3 }
 0x92d   :  { %v1385_v31 = vpop.f32.mrf.mxu3 }
 0x92e   :  { %v1403_v57 = vpack.c.bf16 %v1385_v31, %v1383_v34 }
 0x935   :  { %v1388_v4 = vpop.f32.mrf.mxu3 }
 0x93d   :  { %v1390_v43 = vpop.f32.mrf.mxu3 }
 0x93e   :  { %v1404_v32 = vpack.c.bf16 %v1390_v43, %v1388_v4 }
 0x945   :  { %v1393_v33 = vpop.f32.mrf.mxu3 }
 0x94d   :  { %v1395_v44 = vpop.f32.mrf.mxu3 }
 0x94e   :  { %v1405_v5 = vpack.c.bf16 %v1395_v44, %v1393_v33 }
 0x950   :  { %1408 = vmatpush.bf16.msrb.mxu0 %v1405_v5 }
 0x954   :  { %1409 = vmatpush.bf16.msrb.mxu0 %v1404_v32 }
 0x958   :  { %1410 = vmatpush.bf16.msrb.mxu0 %v1403_v57 }
 0x95c   :  { %1411 = vmatpush.bf16.msrb.mxu0 %v1402_v40 }
 0x960   :  { %1412 = vmatpush.bf16.msrb.mxu0 %v1401_v60 }
 0x964   :  { %1413 = vmatpush.bf16.msrb.mxu0 %v1400_v37 }
 0x968   :  { %1414 = vmatpush.bf16.msrb.mxu0 %v1399_v41 }
 0x96c   :  { %1415 = vmatpush.bf16.msrb.mxu0 %v1398_v42 }
 0x96f   :  { %1416 = vmatmul.bf16.vlgmr.msrb.gmra.mxu0 %v2719_v48 }
 0x97f   :  { %1421 = vmatmul.bf16.gmra.mxu0 %v2725_v9 }
 0x98f   :  { %1426 = vmatmul.bf16.gmra.mxu0 %v2731_v45 }
 0x99f   :  { %1431 = vmatmul.bf16.gmra.mxu0 %v2737_v3 }
 0x9af   :  { %1436 = vmatmul.bf16.gmra.mxu0 %v2743_v35 }
 0x9bf   :  { %1441 = vmatmul.bf16.gmra.mxu0 %v2749_v58 }
 0x9cf   :  { %1446 = vmatmul.bf16.gmra.mxu0 %v2755_v47 }
 0x9df   :  { %1451 = vmatmul.bf16.gmra.mxu0 %v2761_v8 }
 0x9ec   :  { %v1417_v52 = vpop.f32.mrf.mxu0 }
 0x9ed   :  { %v2767_v53 = vadd.f32 %v2298_v11, %v1417_v52 }
 0x9f4   :  { %v1419_v55 = vpop.f32.mrf.mxu0 }
 0x9f5   :  { %v2769_v56 = vadd.f32 %v2298_v11, %v1419_v55 }
 0x9f7   :  { %v1457_v54 = vpack.c.bf16 %v2769_v56, %v2767_v53 }
 0x9f9   :  { %1537 = vmatmul.bf16.vlgmr.msrb.gmra.mxu1 %v1457_v54 }
 0x9fc   :  { %v1422_v61 = vpop.f32.mrf.mxu0 }
 0x9fd   :  { %v2773_v15 = vadd.f32 %v2298_v11, %v1422_v61 }
 0xa04   :  { %v1424_v62 = vpop.f32.mrf.mxu0 }
 0xa05   :  { %v2775_v2 = vadd.f32 %v2298_v11, %v1424_v62 }
 0xa07   :  { %v1458_v63 = vpack.c.bf16 %v2775_v2, %v2773_v15 }
 0xa09   :  { %1542 = vmatmul.bf16.gmra.mxu1 %v1458_v63 }
 0xa0c   :  { %v1427_v6 = vpop.f32.mrf.mxu0 }
 0xa0d   :  { %v2779_v7 = vadd.f32 %v2298_v11, %v1427_v6 }
 0xa14   :  { %v1429_v59 = vpop.f32.mrf.mxu0 }
 0xa15   :  { %v2781_v12 = vadd.f32 %v2298_v11, %v1429_v59 }
 0xa17   :  { %v1459_v13 = vpack.c.bf16 %v2781_v12, %v2779_v7 }
 0xa19   :  { %1547 = vmatmul.bf16.gmra.mxu1 %v1459_v13  ;;  %v2284_v13 = vld [vmem:[#allocation2 + $0x248] sm:$0xff] }
 0xa1a   :  { %1743 = vmatpush.bf16.msrb.mxu3 %v2284_v13 }
 0xa1c   :  { %v1432_v14 = vpop.f32.mrf.mxu0 }
 0xa1d   :  { %v2785_v16 = vadd.f32 %v2298_v11, %v1432_v14  ;;  %v2283_v14 = vld [vmem:[#allocation2 + $0x240] sm:$0xff] }
 0xa1e   :  { %1744 = vmatpush.bf16.msrb.mxu3 %v2283_v14 }
 0xa24   :  { %v1434_v18 = vpop.f32.mrf.mxu0 }
 0xa25   :  { %v2787_v38 = vadd.f32 %v2298_v11, %v1434_v18  ;;  %v2282_v18 = vld [vmem:[#allocation2 + $0x238] sm:$0xff] }
 0xa26   :  { %1745 = vmatpush.bf16.msrb.mxu3 %v2282_v18 }
 0xa27   :  { %v1460_v0 = vpack.c.bf16 %v2787_v38, %v2785_v16 }
 0xa29   :  { %1552 = vmatmul.bf16.gmra.mxu1 %v1460_v0  ;;  %v2281_v0 = vld [vmem:[#allocation2 + $0x230] sm:$0xff] }
 0xa2a   :  { %1746 = vmatpush.bf16.msrb.mxu3 %v2281_v0 }
 0xa2c   :  { %v1437_v19 = vpop.f32.mrf.mxu0 }
 0xa2d   :  { %v2791_v21 = vadd.f32 %v2298_v11, %v1437_v19 }
 0xa34   :  { %v1439_v20 = vpop.f32.mrf.mxu0 }
 0xa35   :  { %v2793_v22 = vadd.f32 %v2298_v11, %v1439_v20 }
 0xa37   :  { %v1461_v24 = vpack.c.bf16 %v2793_v22, %v2791_v21 }
 0xa39   :  { %1557 = vmatmul.bf16.gmra.mxu1 %v1461_v24  ;;  %v1638_v24 = vadd.f32 %v2769_v56, %v2769_v56 }
 0xa3c   :  { %v1442_v17 = vpop.f32.mrf.mxu0 }
 0xa3d   :  { %v2797_v28 = vadd.f32 %v2298_v11, %v1442_v17 }
 0xa3f   :  { %v1647_v14 = vadd.f32 %v2797_v28, %v2797_v28 }
 0xa44   :  { %v1444_v27 = vpop.f32.mrf.mxu0 }
 0xa45   :  { %v2799_v25 = vadd.f32 %v2298_v11, %v1444_v27 }
 0xa47   :  { %v1462_v29 = vpack.c.bf16 %v2799_v25, %v2797_v28  ;;  %v1648_v18 = vadd.f32 %v2799_v25, %v2799_v25 }
 0xa49   :  { %1562 = vmatmul.bf16.gmra.mxu1 %v1462_v29 }
 0xa4c   :  { %v1447_v39 = vpop.f32.mrf.mxu0 }
 0xa4d   :  { %v2803_v30 = vadd.f32 %v2298_v11, %v1447_v39 }
 0xa54   :  { %v1449_v26 = vpop.f32.mrf.mxu0 }
 0xa55   :  { %v2805_v34 = vadd.f32 %v2298_v11, %v1449_v26 }
 0xa57   :  { %v1463_v31 = vpack.c.bf16 %v2805_v34, %v2803_v30 }
 0xa59   :  { %1567 = vmatmul.bf16.gmra.mxu1 %v1463_v31 }
 0xa5c   :  { %v1452_v4 = vpop.f32.mrf.mxu0 }
 0xa5d   :  { %v2809_v33 = vadd.f32 %v2298_v11, %v1452_v4  ;;  %v1639_v4 = vadd.f32 %v2773_v15, %v2773_v15 }
 0xa64   :  { %v1454_v43 = vpop.f32.mrf.mxu0 }
 0xa65   :  { %v2811_v44 = vadd.f32 %v2298_v11, %v1454_v43  ;;  %v1640_v43 = vadd.f32 %v2775_v2, %v2775_v2 }
 0xa67   :  { %v1464_v5 = vpack.c.bf16 %v2811_v44, %v2809_v33 }
 0xa69   :  { %1572 = vmatmul.bf16.gmra.mxu1 %v1464_v5 }
 0xa76   :  { %v1538_v32 = vpop.f32.mrf.mxu1 }
 0xa7e   :  { %v1540_v57 = vpop.f32.mrf.mxu1 }
 0xa7f   :  { %v1578_v40 = vpack.c.bf16 %v1540_v57, %v1538_v32 }
 0xa86   :  { %v1543_v60 = vpop.f32.mrf.mxu1 }
 0xa8e   :  { %v1545_v37 = vpop.f32.mrf.mxu1 }
 0xa8f   :  { %v1579_v41 = vpack.c.bf16 %v1545_v37, %v1543_v60  ;;  %v1641_v37 = vadd.f32 %v2779_v7, %v2779_v7 }
 0xa96   :  { %v1548_v42 = vpop.f32.mrf.mxu1 }
 0xa9e   :  { %v1550_v49 = vpop.f32.mrf.mxu1 }
 0xa9f   :  { %v1580_v36 = vpack.c.bf16 %v1550_v49, %v1548_v42 }
 0xaa6   :  { %v1553_v23 = vpop.f32.mrf.mxu1 }
 0xaae   :  { %v1555_v10 = vpop.f32.mrf.mxu1 }
 0xaaf   :  { %v1581_v46 = vpack.c.bf16 %v1555_v10, %v1553_v23 }
 0xab6   :  { %v1558_v1 = vpop.f32.mrf.mxu1 }
 0xabe   :  { %v1560_v50 = vpop.f32.mrf.mxu1 }
 0xabf   :  { %v1582_v59 = vpack.c.bf16 %v1560_v50, %v1558_v1  ;;  %v1644_v1 = vadd.f32 %v2787_v38, %v2787_v38 }
 0xac6   :  { %v1563_v51 = vpop.f32.mrf.mxu1 }
 0xace   :  { %v1565_v52 = vpop.f32.mrf.mxu1 }
 0xacf   :  { %v1583_v6 = vpack.c.bf16 %v1565_v52, %v1563_v51 }
 0xad6   :  { %v1568_v11 = vpop.f32.mrf.mxu1 }
 0xade   :  { %v1570_v55 = vpop.f32.mrf.mxu1 }
 0xadf   :  { %v1584_v63 = vpack.c.bf16 %v1570_v55, %v1568_v11 }
 0xae6   :  { %v1573_v54 = vpop.f32.mrf.mxu1 }
 0xaee   :  { %v1575_v61 = vpop.f32.mrf.mxu1 }
 0xaef   :  { %v1585_v62 = vpack.c.bf16 %v1575_v61, %v1573_v54  ;;  %v1645_v54 = vadd.f32 %v2791_v21, %v2791_v21  ;;  %v1646_v61 = vadd.f32 %v2793_v22, %v2793_v22 }
 0xaf1   :  { %1588 = vmatpush.bf16.msrb.mxu2 %v1585_v62 }
 0xaf5   :  { %1589 = vmatpush.bf16.msrb.mxu2 %v1584_v63 }
 0xaf9   :  { %1590 = vmatpush.bf16.msrb.mxu2 %v1583_v6 }
 0xafd   :  { %1591 = vmatpush.bf16.msrb.mxu2 %v1582_v59 }
 0xb01   :  { %1592 = vmatpush.bf16.msrb.mxu2 %v1581_v46  ;;  %v1643_v46 = vadd.f32 %v2785_v16, %v2785_v16 }
 0xb05   :  { %1593 = vmatpush.bf16.msrb.mxu2 %v1580_v36 }
 0xb09   :  { %1594 = vmatpush.bf16.msrb.mxu2 %v1579_v41  ;;  %v1642_v41 = vadd.f32 %v2781_v12, %v2781_v12 }
 0xb0d   :  { %1595 = vmatpush.bf16.msrb.mxu2 %v1578_v40 }
 0xb10   :  { %1596 = vmatmul.bf16.vlgmr.msrb.gmra.mxu2 %v2719_v48  ;;  %v2280_v48 = vld [vmem:[#allocation2 + $0x228] sm:$0xff] }
 0xb11   :  { %1747 = vmatpush.bf16.msrb.mxu3 %v2280_v48 }
 0xb20   :  { %1601 = vmatmul.bf16.gmra.mxu2 %v2725_v9  ;;  %v2279_v9 = vld [vmem:[#allocation2 + $0x220] sm:$0xff] }
 0xb21   :  { %1748 = vmatpush.bf16.msrb.mxu3 %v2279_v9 }
 0xb30   :  { %1606 = vmatmul.bf16.gmra.mxu2 %v2731_v45  ;;  %v2278_v45 = vld [vmem:[#allocation2 + $0x218] sm:$0xff] }
 0xb31   :  { %1749 = vmatpush.bf16.msrb.mxu3 %v2278_v45 }
 0xb40   :  { %1611 = vmatmul.bf16.gmra.mxu2 %v2737_v3  ;;  %v2277_v3 = vld [vmem:[#allocation2 + $0x210] sm:$0xff] }
 0xb41   :  { %1750 = vmatpush.bf16.msrb.mxu3 %v2277_v3 }
 0xb50   :  { %1616 = vmatmul.bf16.gmra.mxu2 %v2743_v35 }
 0xb60   :  { %1621 = vmatmul.bf16.gmra.mxu2 %v2749_v58  ;;  %v2826_v58 = vld [vmem:[%s2885_s3 + $0x8] ss:$0 sm:$0xff] }
 0xb70   :  { %1626 = vmatmul.bf16.gmra.mxu2 %v2755_v47  ;;  %v1637_v47 = vadd.f32 %v2767_v53, %v2767_v53 }
 0xb80   :  { %1631 = vmatmul.bf16.gmra.mxu2 %v2761_v8 }
 0xb93   :  { %v1597_v35 = vpop.f32.mrf.mxu2 }
 0xb94   :  { %v1598_v19 = vadd.f32 %v2826_v58, %v1597_v35  ;;  %v1649_v35 = vadd.f32 %v2803_v30, %v2803_v30 }
 0xb96   :  { %v1653_v27 = vadd.f32 %v1637_v47, %v1598_v19  ;;  %v1650_v19 = vadd.f32 %v2805_v34, %v2805_v34 }
 0xb9b   :  { %v1599_v20 = vpop.f32.mrf.mxu2 }
 0xb9c   :  { %v1600_v17 = vadd.f32 %v2826_v58, %v1599_v20 }
 0xb9e   :  { %v1654_v29 = vadd.f32 %v1638_v24, %v1600_v17 }
 0xba0   :  { %v1669_v8 = vpack.c.bf16 %v1654_v29, %v1653_v27  ;;  %v1651_v29 = vadd.f32 %v2809_v33, %v2809_v33 }
 0xba2   :  { %1751 = vmatmul.bf16.vlgmr.msrb.gmra.mxu3 %v1669_v8  ;;  %v1652_v8 = vadd.f32 %v2811_v44, %v2811_v44 }
 0xba3   :  { %v1602_v39 = vpop.f32.mrf.mxu2 }
 0xba4   :  { %v1603_v26 = vadd.f32 %v2826_v58, %v1602_v39 }
 0xba6   :  { %v1655_v5 = vadd.f32 %v1639_v4, %v1603_v26 }
 0xbab   :  { %v1604_v31 = vpop.f32.mrf.mxu2 }
 0xbac   :  { %v1605_v53 = vadd.f32 %v2826_v58, %v1604_v31  ;;  %v2300_v31 = vld [vmem:[%s2885_s3 + $0x9] ss:$0 sm:$0xff]  ;;  %s2364_s3 = smov [#allocation5]  }
 0xbad   :  { %s1812_s6 = sshll.u32 %s2364_s3, 4  ;;  %s1813_s6 = int_to_ptr.vmem [resolvable:$true] %s1812_s6 }
 0xbae   :  { %v1656_v56 = vadd.f32 %v1640_v43, %v1605_v53 }
 0xbb0   :  { %v1670_v32 = vpack.c.bf16 %v1656_v56, %v1655_v5 }
 0xbb2   :  { %1756 = vmatmul.bf16.gmra.mxu3 %v1670_v32 }
 0xbb3   :  { %v1607_v57 = vpop.f32.mrf.mxu2 }
 0xbb4   :  { %v1608_v40 = vadd.f32 %v2826_v58, %v1607_v57 }
 0xbb6   :  { %v1657_v42 = vadd.f32 %v1641_v37, %v1608_v40 }
 0xbbb   :  { %v1609_v60 = vpop.f32.mrf.mxu2 }
 0xbbc   :  { %v1610_v15 = vadd.f32 %v2826_v58, %v1609_v60 }
 0xbbe   :  { %v1658_v2 = vadd.f32 %v1642_v41, %v1610_v15 }
 0xbc0   :  { %v1671_v49 = vpack.c.bf16 %v1658_v2, %v1657_v42 }
 0xbc2   :  { %1761 = vmatmul.bf16.gmra.mxu3 %v1671_v49 }
 0xbc3   :  { %v1612_v36 = vpop.f32.mrf.mxu2 }
 0xbc4   :  { %v1613_v23 = vadd.f32 %v2826_v58, %v1612_v36 }
 0xbc6   :  { %v1659_v50 = vadd.f32 %v1643_v46, %v1613_v23 }
 0xbcb   :  { %v1614_v10 = vpop.f32.mrf.mxu2 }
 0xbcc   :  { %v1615_v7 = vadd.f32 %v2826_v58, %v1614_v10 }
 0xbce   :  { %v1660_v12 = vadd.f32 %v1644_v1, %v1615_v7 }
 0xbd0   :  { %v1672_v51 = vpack.c.bf16 %v1660_v12, %v1659_v50 }
 0xbd2   :  { %1766 = vmatmul.bf16.gmra.mxu3 %v1672_v51 }
 0xbd3   :  { %v1617_v52 = vpop.f32.mrf.mxu2 }
 0xbd4   :  { %v1618_v11 = vadd.f32 %v2826_v58, %v1617_v52 }
 0xbd6   :  { %v1661_v62 = vadd.f32 %v1645_v54, %v1618_v11 }
 0xbdb   :  { %v1619_v55 = vpop.f32.mrf.mxu2 }
 0xbdc   :  { %v1620_v16 = vadd.f32 %v2826_v58, %v1619_v55 }
 0xbde   :  { %v1662_v38 = vadd.f32 %v1646_v61, %v1620_v16 }
 0xbe0   :  { %v1673_v63 = vpack.c.bf16 %v1662_v38, %v1661_v62 }
 0xbe2   :  { %1771 = vmatmul.bf16.gmra.mxu3 %v1673_v63 }
 0xbe3   :  { %v1622_v6 = vpop.f32.mrf.mxu2 }
 0xbe4   :  { %v1623_v59 = vadd.f32 %v2826_v58, %v1622_v6 }
 0xbe6   :  { %v1663_v0 = vadd.f32 %v1647_v14, %v1623_v59 }
 0xbeb   :  { %v1624_v13 = vpop.f32.mrf.mxu2 }
 0xbec   :  { %v1625_v21 = vadd.f32 %v2826_v58, %v1624_v13 }
 0xbee   :  { %v1664_v22 = vadd.f32 %v1648_v18, %v1625_v21 }
 0xbf0   :  { %v1674_v48 = vpack.c.bf16 %v1664_v22, %v1663_v0 }
 0xbf2   :  { %1776 = vmatmul.bf16.gmra.mxu3 %v1674_v48 }
 0xbf3   :  { %v1627_v9 = vpop.f32.mrf.mxu2 }
 0xbf4   :  { %v1628_v45 = vadd.f32 %v2826_v58, %v1627_v9 }
 0xbf6   :  { %v1665_v20 = vadd.f32 %v1649_v35, %v1628_v45 }
 0xbfb   :  { %v1629_v3 = vpop.f32.mrf.mxu2 }
 0xbfc   :  { %v1630_v28 = vadd.f32 %v2826_v58, %v1629_v3 }
 0xbfe   :  { %v1666_v25 = vadd.f32 %v1650_v19, %v1630_v28 }
 0xc00   :  { %v1675_v47 = vpack.c.bf16 %v1666_v25, %v1665_v20 }
 0xc02   :  { %1781 = vmatmul.bf16.gmra.mxu3 %v1675_v47 }
 0xc03   :  { %v1632_v24 = vpop.f32.mrf.mxu2 }
 0xc04   :  { %v1633_v17 = vadd.f32 %v2826_v58, %v1632_v24 }
 0xc06   :  { %v1667_v39 = vadd.f32 %v1651_v29, %v1633_v17 }
 0xc0b   :  { %v1634_v27 = vpop.f32.mrf.mxu2 }
 0xc0c   :  { %v1635_v30 = vadd.f32 %v2826_v58, %v1634_v27 }
 0xc0e   :  { %v1668_v34 = vadd.f32 %v1652_v8, %v1635_v30 }
 0xc10   :  { %v1676_v26 = vpack.c.bf16 %v1668_v34, %v1667_v39 }
 0xc12   :  { %1786 = vmatmul.bf16.gmra.mxu3 %v1676_v26 }
 0xc25   :  { %v1752_v4 = vpop.f32.mrf.mxu3 }
 0xc26   :  { %v1753_v43 = vadd.f32 %v2300_v31, %v1752_v4 }
 0xc28   :  { %1792 = vst [vmem:[#allocation5] sm:$0xff] %v1753_v43 }
 0xc2d   :  { %v1754_v53 = vpop.f32.mrf.mxu3 }
 0xc2e   :  { %v1755_v5 = vadd.f32 %v2300_v31, %v1754_v53 }
 0xc30   :  { %1793 = vst [vmem:[#allocation5 + $0x8] sm:$0xff] %v1755_v5 }
 0xc35   :  { %v1757_v33 = vpop.f32.mrf.mxu3 }
 0xc36   :  { %v1758_v56 = vadd.f32 %v2300_v31, %v1757_v33 }
 0xc38   :  { %1794 = vst [vmem:[#allocation5 + $0x10] sm:$0xff] %v1758_v56 }
 0xc3d   :  { %v1759_v44 = vpop.f32.mrf.mxu3 }
 0xc3e   :  { %v1760_v32 = vadd.f32 %v2300_v31, %v1759_v44 }
 0xc40   :  { %1795 = vst [vmem:[#allocation5 + $0x18] sm:$0xff] %v1760_v32 }
 0xc45   :  { %v1762_v58 = vpop.f32.mrf.mxu3 }
 0xc46   :  { %v1763_v57 = vadd.f32 %v2300_v31, %v1762_v58 }
 0xc48   :  { %1796 = vst [vmem:[#allocation5 + $0x20] sm:$0xff] %v1763_v57 }
 0xc4d   :  { %v1764_v40 = vpop.f32.mrf.mxu3 }
 0xc4e   :  { %v1765_v60 = vadd.f32 %v2300_v31, %v1764_v40 }
 0xc50   :  { %1797 = vst [vmem:[#allocation5 + $0x28] sm:$0xff] %v1765_v60 }
 0xc55   :  { %v1767_v37 = vpop.f32.mrf.mxu3 }
 0xc56   :  { %v1768_v41 = vadd.f32 %v2300_v31, %v1767_v37 }
 0xc58   :  { %1798 = vst [vmem:[#allocation5 + $0x30] sm:$0xff] %v1768_v41 }
 0xc5d   :  { %v1769_v15 = vpop.f32.mrf.mxu3 }
 0xc5e   :  { %v1770_v42 = vadd.f32 %v2300_v31, %v1769_v15 }
 0xc60   :  { %1799 = vst [vmem:[#allocation5 + $0x38] sm:$0xff] %v1770_v42 }
 0xc65   :  { %v1772_v2 = vpop.f32.mrf.mxu3 }
 0xc66   :  { %v1773_v49 = vadd.f32 %v2300_v31, %v1772_v2 }
 0xc68   :  { %1800 = vst [vmem:[#allocation5 + $0x40] sm:$0xff] %v1773_v49 }
 0xc6d   :  { %v1774_v36 = vpop.f32.mrf.mxu3 }
 0xc6e   :  { %v1775_v23 = vadd.f32 %v2300_v31, %v1774_v36 }
 0xc70   :  { %1801 = vst [vmem:[#allocation5 + $0x48] sm:$0xff] %v1775_v23 }
 0xc75   :  { %v1777_v10 = vpop.f32.mrf.mxu3 }
 0xc76   :  { %v1778_v46 = vadd.f32 %v2300_v31, %v1777_v10 }
 0xc78   :  { %1802 = vst [vmem:[#allocation5 + $0x50] sm:$0xff] %v1778_v46 }
 0xc7d   :  { %v1779_v1 = vpop.f32.mrf.mxu3 }
 0xc7e   :  { %v1780_v7 = vadd.f32 %v2300_v31, %v1779_v1 }
 0xc80   :  { %1803 = vst [vmem:[#allocation5 + $0x58] sm:$0xff] %v1780_v7 }
 0xc85   :  { %v1782_v50 = vpop.f32.mrf.mxu3 }
 0xc86   :  { %v1783_v12 = vadd.f32 %v2300_v31, %v1782_v50 }
 0xc88   :  { %1804 = vst [vmem:[#allocation5 + $0x60] sm:$0xff] %v1783_v12 }
 0xc8d   :  { %v1784_v51 = vpop.f32.mrf.mxu3 }
 0xc8e   :  { %v1785_v52 = vadd.f32 %v2300_v31, %v1784_v51 }
 0xc90   :  { %1805 = vst [vmem:[#allocation5 + $0x68] sm:$0xff] %v1785_v52 }
 0xc95   :  { %v1787_v11 = vpop.f32.mrf.mxu3 }
 0xc96   :  { %v1788_v55 = vadd.f32 %v2300_v31, %v1787_v11 }
 0xc98   :  { %1806 = vst [vmem:[#allocation5 + $0x70] sm:$0xff] %v1788_v55 }
 0xc9d   :  { %v1789_v54 = vpop.f32.mrf.mxu3 }
 0xc9e   :  { %v1790_v61 = vadd.f32 %v2300_v31, %v1789_v54 }
 0xca0   :  { %1807 = vst [vmem:[#allocation5 + $0x78] sm:$0xff] %v1790_v61 }
 0xca1   :  { %1820 = dma.vmem_to_hbm [thread:$0]  %s1813_s6, 2048, %s1815_s9, [#allocation4], %s2365_s10, %s2365_s10, %s2366_s11  }
 0xca2   :  { %2359 = dma.done.wait [#allocation4], 2048  }
 0xca3   :  { %2360 = vsyncadd [#allocation4], 4294965248 }
 0xca4   :  { %1825 = vsyncpa [#allocation3], 1 }
 0xca5   :  { %1826 = vsyncpa [#allocation4], 1 }

</bundles_post_ra>
